<compile_context>
chip_gen: v6e
topology: v6e:2x2x1
jax: 0.10.0
libtpu: 0.0.40
codegen_flags: <defaults>
</compile_context>

<pallas_src>
import jax
import jax.numpy as jnp
from jax import lax
from jax.experimental import pallas as pl
from jax.experimental.pallas import tpu as pltpu

# Module hyperparameters (from the PyTorch source).
EMBED_SIZE = 384
N_HEAD = 6
HEAD_SIZE = EMBED_SIZE // N_HEAD  # 64
BLOCK_SIZE = 256  # max context; we only use T <= BLOCK_SIZE

_NEG_INF = -1e30  # large finite negative; same softmax result as -inf, NaN-safe


def _attend_qtile(q16, k16, v16, qi, tq, kv_len):
    """One head, one query tile of causal softmax(q k^T) v.

    q16:  (tq, hs) bf16  -- query rows [qi*tq, (qi+1)*tq), scale folded into Wq
    k16:  (kv_len, hs) bf16
    v16:  (kv_len, hs) bf16
    returns (tq, hs) f32
    """
    # q @ k^T via dot_general (contraction on dim 1 of both) -> no transpose op.
    s = lax.dot_general(q16, k16, (((1,), (1,)), ((), ())),
                        preferred_element_type=jnp.float32)       # (tq, kv_len) f32
    # Causal mask: only the trailing tq columns (the diagonal block) can be
    # masked; earlier kv blocks are fully visible by construction.
    row_g = lax.broadcasted_iota(jnp.int32, (tq, kv_len), 0) + qi * tq
    col_g = lax.broadcasted_iota(jnp.int32, (tq, kv_len), 1)
    s = jnp.where(col_g <= row_g, s, _NEG_INF)

    # Softmax (un-normalized); fold 1/denom into the small (tq, hs) output
    # instead of dividing the (tq, kv_len) probability matrix.
    s = s - jnp.max(s, axis=-1, keepdims=True)
    p = jnp.exp(s)                                                 # f32 (v5e-safe)
    denom = jnp.sum(p, axis=-1, keepdims=True)

    o = jnp.dot(p.astype(jnp.bfloat16), v16,
                preferred_element_type=jnp.float32)                # (tq, hs) f32
    return o * pl.reciprocal(denom, approx=True)


# ---------------------------------------------------------------------------
# Fused kernel: per-batch multi-head causal attention + output projection.
#   refs: x (T, E), wqkv (E, 3E) bf16, wproj (E, E) bf16, b (1, E) f32
#         -> out (T, E);  cat_ref: (T, E) f32 VMEM scratch (concat of heads).
#   wqkv columns: [q_head0..q_head5 | k_head0..k_head5 | v_head0..v_head5],
#   with the q columns pre-scaled by EMBED_SIZE**-0.5.
# ---------------------------------------------------------------------------
def _heads_kernel(x_ref, wqkv_ref, wproj_ref, b_ref, out_ref, cat_ref):
    T = x_ref.shape[0]
    # Query-tile size: 128-row tiles when T divides evenly, else one tile.
    tq = 128 if (T % 128 == 0) else T
    n_qt = T // tq

    # (1) Fused Q/K/V projection for ALL heads: one lane-dense bf16 matmul.
    x16 = x_ref[...].astype(jnp.bfloat16)
    qkv = jnp.dot(x16, wqkv_ref[...], preferred_element_type=jnp.float32)  # (T, 3E)
    qkv16 = qkv.astype(jnp.bfloat16)   # bf16 operands for the attention matmuls

    # (2) Attention per head-pair; each pair's output is a 128-lane granule
    #     written straight into the (T, E) scratch (no list / concat of 6 heads,
    #     score/prob intermediates are dead after each store).
    for pair in range(N_HEAD // 2):
        h0 = 2 * pair
        h1 = h0 + 1
        q0 = qkv16[:, h0 * HEAD_SIZE:(h0 + 1) * HEAD_SIZE]
        q1 = qkv16[:, h1 * HEAD_SIZE:(h1 + 1) * HEAD_SIZE]
        k0 = qkv16[:, EMBED_SIZE + h0 * HEAD_SIZE:EMBED_SIZE + (h0 + 1) * HEAD_SIZE]
        k1 = qkv16[:, EMBED_SIZE + h1 * HEAD_SIZE:EMBED_SIZE + (h1 + 1) * HEAD_SIZE]
        v0 = qkv16[:, 2 * EMBED_SIZE + h0 * HEAD_SIZE:2 * EMBED_SIZE + (h0 + 1) * HEAD_SIZE]
        v1 = qkv16[:, 2 * EMBED_SIZE + h1 * HEAD_SIZE:2 * EMBED_SIZE + (h1 + 1) * HEAD_SIZE]

        for qi in range(n_qt):
            r0, r1 = qi * tq, (qi + 1) * tq
            kv_len = r1  # causal: this query tile never attends past its last row
            o0 = _attend_qtile(q0[r0:r1, :], k0[:kv_len, :], v0[:kv_len, :], qi, tq, kv_len)
            o1 = _attend_qtile(q1[r0:r1, :], k1[:kv_len, :], v1[:kv_len, :], qi, tq, kv_len)
            c0 = pair * (2 * HEAD_SIZE)
            cat_ref[r0:r1, c0:c0 + 2 * HEAD_SIZE] = jnp.concatenate([o0, o1], axis=-1)

    # (3) Fused output projection on the concatenated heads (bf16 operands).
    cat16 = cat_ref[...].astype(jnp.bfloat16)
    proj = jnp.dot(cat16, wproj_ref[...], preferred_element_type=jnp.float32)
    out_ref[...] = (proj + b_ref[...]).astype(out_ref.dtype)


# ---------------------------------------------------------------------------
# One-time parameter preparation (outside the hot path).
#   wq/wk/wv: (H, E, hs) -> stacked (E, 3E) bf16 with the attention scale folded
#   into the q columns; w_proj -> bf16; b_proj reshaped to (1, E) f32.
# ---------------------------------------------------------------------------
def prepare_params(wq, wk, wv, w_proj, b_proj, compute_dtype=jnp.bfloat16):
    H, E, hs = wq.shape
    scale = jnp.asarray(E, jnp.float32) ** -0.5
    wq_cat = jnp.transpose(wq, (1, 0, 2)).reshape(E, H * hs) * scale
    wk_cat = jnp.transpose(wk, (1, 0, 2)).reshape(E, H * hs)
    wv_cat = jnp.transpose(wv, (1, 0, 2)).reshape(E, H * hs)
    w_qkv = jnp.concatenate([wq_cat, wk_cat, wv_cat], axis=1).astype(compute_dtype)
    return w_qkv, w_proj.astype(compute_dtype), b_proj.reshape(1, E).astype(jnp.float32)


def heads_forward(x, w_qkv, w_proj, b_proj2d):
    """Fused multi-head causal attention + projection.

    x:        (B, T, E)  (any float dtype; cast to bf16 for the MXU inside)
    w_qkv:    (E, 3E) bf16   stacked [Wq*scale | Wk | Wv] (see prepare_params)
    w_proj:   (E, E)  bf16   (already transposed vs. torch Linear.weight)
    b_proj2d: (1, E)  f32
    """
    B, T, E = x.shape

    # VMEM per grid step (T<=256): x f32 384KiB + out f32 384KiB (x2 buffers each)
    # + bf16 weights ~1.1MiB (x2) + (T,E) f32 scratch 384KiB + intermediates
    # -> well under the default scoped limit on v5e/v6e/v7x.
    return pl.pallas_call(
        _heads_kernel,
        out_shape=jax.ShapeDtypeStruct((B, T, E), x.dtype),
        grid_spec=pltpu.PrefetchScalarGridSpec(
            num_scalar_prefetch=0,
            grid=(B,),
            in_specs=[
                pl.BlockSpec((None, T, E), lambda b: (b, 0, 0)),      # x[b]
                pl.BlockSpec((E, 3 * E), lambda b: (0, 0)),           # W_qkv (resident)
                pl.BlockSpec((E, E), lambda b: (0, 0)),               # W_proj (resident)
                pl.BlockSpec((1, E), lambda b: (0, 0)),               # bias
            ],
            out_specs=pl.BlockSpec((None, T, E), lambda b: (b, 0, 0)),
            scratch_shapes=[pltpu.VMEM((T, E), jnp.float32)],         # concat of heads
        ),
        compiler_params=pltpu.CompilerParams(
            dimension_semantics=("parallel",)),  # batch axis shards across TCs
    )(x, w_qkv, w_proj, b_proj2d)


# ---------------------------------------------------------------------------
# Pure-JAX f32 reference for correctness check.
# ---------------------------------------------------------------------------
def heads_reference(x, wq, wk, wv, w_proj, b_proj):
    B, T, E = x.shape
    H, _, hs = wq.shape
    q = jnp.einsum("bte,hed->bhtd", x, wq)
    k = jnp.einsum("bte,hed->bhtd", x, wk)
    v = jnp.einsum("bte,hed->bhtd", x, wv)
    s = jnp.einsum("bhtd,bhsd->bhts", q, k) * (E ** -0.5)
    mask = jnp.tril(jnp.ones((T, T), dtype=bool))
    s = jnp.where(mask[None, None], s, -jnp.inf)
    p = jax.nn.softmax(s, axis=-1)
    o = jnp.einsum("bhts,bhsd->bhtd", p, v)
    cat = jnp.transpose(o, (0, 2, 1, 3)).reshape(B, T, H * hs)
    return cat @ w_proj + b_proj


if __name__ == "__main__":
    B, T, E, H, hs = 2, 8, EMBED_SIZE, N_HEAD, HEAD_SIZE

    key = jax.random.PRNGKey(0)
    kx, kq, kk, kv, kw, kb = jax.random.split(key, 6)

    x = jax.random.normal(kx, (B, T, E), dtype=jnp.float32)
    # Deterministic synthetic parameters (torch-Linear-like scale).
    scale_in = 1.0 / (E ** 0.5)
    wq = jax.random.uniform(kq, (H, E, hs), minval=-scale_in, maxval=scale_in, dtype=jnp.float32)
    wk = jax.random.uniform(kk, (H, E, hs), minval=-scale_in, maxval=scale_in, dtype=jnp.float32)
    wv = jax.random.uniform(kv, (H, E, hs), minval=-scale_in, maxval=scale_in, dtype=jnp.float32)
    w_proj = jax.random.uniform(kw, (E, E), minval=-scale_in, maxval=scale_in, dtype=jnp.float32)
    b_proj = jax.random.uniform(kb, (E,), minval=-scale_in, maxval=scale_in, dtype=jnp.float32)

    # One-time weight prep (stack Q/K/V, fold attention scale into Wq, cast bf16).
    w_qkv, w_p, b_p = prepare_params(wq, wk, wv, w_proj, b_proj)

    out = jax.block_until_ready(heads_forward(x, w_qkv, w_p, b_p))

    ref = heads_reference(x, wq, wk, wv, w_proj, b_proj)
    assert out.shape == (B, T, E)
    # bf16 MXU operands vs. f32 reference -> loosened tolerance (still far below
    # the output magnitude, so real indexing/masking bugs would be caught).
    err = jnp.max(jnp.abs(out - ref))
    assert jnp.allclose(out, ref, atol=5e-2, rtol=5e-2), f"mismatch vs reference, max|diff|={err}"

    print("KERNEL_OK")
</pallas_src>

<mosaic_0001>
module attributes {stable_mosaic.version = 11 : i64} {
  func.func @_heads_kernel(%arg0: i32, %arg1: memref<1x8x384xf32, #tpu.memory_space<vmem>>, %arg2: memref<384x1152xbf16, #tpu.memory_space<vmem>>, %arg3: memref<384x384xbf16, #tpu.memory_space<vmem>>, %arg4: memref<1x384xf32, #tpu.memory_space<vmem>>, %arg5: memref<1x8x384xf32, #tpu.memory_space<vmem>>, %arg6: memref<8x384xf32, #tpu.memory_space<vmem>>) attributes {dimension_semantics = [#tpu.dimension_semantics<parallel>], iteration_bounds = array<i64: 2>, scalar_prefetch = 0 : i64, scratch_operands = 1 : i64, tpu.core_type = #tpu.core_type<tc>, window_params = [{transform_indices = @transform_0, window_bounds = array<i64: 1, 8, 384>}, {pipeline_mode = #tpu.pipeline_mode<synchronous>, transform_indices = @transform_1, window_bounds = array<i64: 384, 1152>}, {pipeline_mode = #tpu.pipeline_mode<synchronous>, transform_indices = @transform_2, window_bounds = array<i64: 384, 384>}, {pipeline_mode = #tpu.pipeline_mode<synchronous>, transform_indices = @transform_3, window_bounds = array<i64: 1, 384>}, {transform_indices = @transform_4, window_bounds = array<i64: 1, 8, 384>}]} {
    %c0 = arith.constant 0 : index
    %c0_0 = arith.constant 0 : index
    %c0_1 = arith.constant 0 : index
    %0 = vector.load %arg1[%c0, %c0_0, %c0_1] : memref<1x8x384xf32, #tpu.memory_space<vmem>>, vector<1x8x384xf32>
    %1 = vector.shape_cast %0 : vector<1x8x384xf32> to vector<8x384xf32>
    %2 = arith.truncf %1 : vector<8x384xf32> to vector<8x384xbf16>
    %c0_2 = arith.constant 0 : index
    %c0_3 = arith.constant 0 : index
    %3 = vector.load %arg2[%c0_2, %c0_3] : memref<384x1152xbf16, #tpu.memory_space<vmem>>, vector<384x1152xbf16>
    %cst = arith.constant dense<0.000000e+00> : vector<8x1152xf32>
    %4 = tpu.matmul %2, %3, %cst {dimension_numbers = #tpu.dot_dimension_numbers<[1], [0], [0], [1], [0, 0, 1, 1], [], []>} : vector<8x384xbf16>, vector<384x1152xbf16>, vector<8x1152xf32> -> vector<8x1152xf32>
    %5 = arith.truncf %4 : vector<8x1152xf32> to vector<8x1152xbf16>
    %6 = vector.extract_strided_slice %5 {offsets = [0, 0], sizes = [8, 64], strides = [1, 1]} : vector<8x1152xbf16> to vector<8x64xbf16>
    %7 = vector.extract_strided_slice %5 {offsets = [0, 64], sizes = [8, 64], strides = [1, 1]} : vector<8x1152xbf16> to vector<8x64xbf16>
    %8 = vector.extract_strided_slice %5 {offsets = [0, 384], sizes = [8, 64], strides = [1, 1]} : vector<8x1152xbf16> to vector<8x64xbf16>
    %9 = vector.extract_strided_slice %5 {offsets = [0, 448], sizes = [8, 64], strides = [1, 1]} : vector<8x1152xbf16> to vector<8x64xbf16>
    %10 = vector.extract_strided_slice %5 {offsets = [0, 768], sizes = [8, 64], strides = [1, 1]} : vector<8x1152xbf16> to vector<8x64xbf16>
    %11 = vector.extract_strided_slice %5 {offsets = [0, 832], sizes = [8, 64], strides = [1, 1]} : vector<8x1152xbf16> to vector<8x64xbf16>
    %cst_4 = arith.constant dense<0.000000e+00> : vector<8x8xf32>
    %12 = tpu.matmul %6, %8, %cst_4 {dimension_numbers = #tpu.dot_dimension_numbers<[1], [1], [0], [0], [0, 0, 1, 0], [], []>} : vector<8x64xbf16>, vector<8x64xbf16>, vector<8x8xf32> -> vector<8x8xf32>
    %13 = tpu.iota {dimensions = array<i32: 0>} : vector<8x8xi32>
    %c0_i32 = arith.constant 0 : i32
    %14 = vector.broadcast %c0_i32 : i32 to vector<8x8xi32>
    %15 = arith.addi %13, %14 : vector<8x8xi32>
    %16 = tpu.iota {dimensions = array<i32: 1>} : vector<8x8xi32>
    %17 = arith.cmpi sle, %16, %15 : vector<8x8xi32>
    %cst_5 = arith.constant -1.000000e+30 : f32
    %18 = vector.broadcast %cst_5 : f32 to vector<8x8xf32>
    %19 = arith.select %17, %12, %18 : vector<8x8xi1>, vector<8x8xf32>
    %cst_6 = arith.constant dense<0xFF800000> : vector<8xf32>
    %20 = vector.multi_reduction <maximumf>, %19, %cst_6 [1] : vector<8x8xf32> to vector<8xf32>
    %21 = vector.shape_cast %20 : vector<8xf32> to vector<8x1xf32>
    %22 = vector.broadcast %21 : vector<8x1xf32> to vector<8x8xf32>
    %23 = arith.subf %19, %22 : vector<8x8xf32>
    %24 = math.exp %23 : vector<8x8xf32>
    %cst_7 = arith.constant dense<0.000000e+00> : vector<8xf32>
    %25 = vector.multi_reduction <add>, %24, %cst_7 [1] : vector<8x8xf32> to vector<8xf32>
    %26 = vector.shape_cast %25 : vector<8xf32> to vector<8x1xf32>
    %27 = arith.truncf %24 : vector<8x8xf32> to vector<8x8xbf16>
    %cst_8 = arith.constant dense<0.000000e+00> : vector<8x64xf32>
    %28 = tpu.matmul %27, %10, %cst_8 {dimension_numbers = #tpu.dot_dimension_numbers<[1], [0], [0], [1], [0, 0, 1, 1], [], []>} : vector<8x8xbf16>, vector<8x64xbf16>, vector<8x64xf32> -> vector<8x64xf32>
    %29 = tpu.reciprocal %26 {approx = true} : vector<8x1xf32> -> vector<8x1xf32>
    %30 = vector.broadcast %29 : vector<8x1xf32> to vector<8x64xf32>
    %31 = arith.mulf %28, %30 : vector<8x64xf32>
    %cst_9 = arith.constant dense<0.000000e+00> : vector<8x8xf32>
    %32 = tpu.matmul %7, %9, %cst_9 {dimension_numbers = #tpu.dot_dimension_numbers<[1], [1], [0], [0], [0, 0, 1, 0], [], []>} : vector<8x64xbf16>, vector<8x64xbf16>, vector<8x8xf32> -> vector<8x8xf32>
    %33 = tpu.iota {dimensions = array<i32: 0>} : vector<8x8xi32>
    %c0_i32_10 = arith.constant 0 : i32
    %34 = vector.broadcast %c0_i32_10 : i32 to vector<8x8xi32>
    %35 = arith.addi %33, %34 : vector<8x8xi32>
    %36 = tpu.iota {dimensions = array<i32: 1>} : vector<8x8xi32>
    %37 = arith.cmpi sle, %36, %35 : vector<8x8xi32>
    %cst_11 = arith.constant -1.000000e+30 : f32
    %38 = vector.broadcast %cst_11 : f32 to vector<8x8xf32>
    %39 = arith.select %37, %32, %38 : vector<8x8xi1>, vector<8x8xf32>
    %cst_12 = arith.constant dense<0xFF800000> : vector<8xf32>
    %40 = vector.multi_reduction <maximumf>, %39, %cst_12 [1] : vector<8x8xf32> to vector<8xf32>
    %41 = vector.shape_cast %40 : vector<8xf32> to vector<8x1xf32>
    %42 = vector.broadcast %41 : vector<8x1xf32> to vector<8x8xf32>
    %43 = arith.subf %39, %42 : vector<8x8xf32>
    %44 = math.exp %43 : vector<8x8xf32>
    %cst_13 = arith.constant dense<0.000000e+00> : vector<8xf32>
    %45 = vector.multi_reduction <add>, %44, %cst_13 [1] : vector<8x8xf32> to vector<8xf32>
    %46 = vector.shape_cast %45 : vector<8xf32> to vector<8x1xf32>
    %47 = arith.truncf %44 : vector<8x8xf32> to vector<8x8xbf16>
    %cst_14 = arith.constant dense<0.000000e+00> : vector<8x64xf32>
    %48 = tpu.matmul %47, %11, %cst_14 {dimension_numbers = #tpu.dot_dimension_numbers<[1], [0], [0], [1], [0, 0, 1, 1], [], []>} : vector<8x8xbf16>, vector<8x64xbf16>, vector<8x64xf32> -> vector<8x64xf32>
    %49 = tpu.reciprocal %46 {approx = true} : vector<8x1xf32> -> vector<8x1xf32>
    %50 = vector.broadcast %49 : vector<8x1xf32> to vector<8x64xf32>
    %51 = arith.mulf %48, %50 : vector<8x64xf32>
    %52 = tpu.concatenate %31, %51 in 1 : vector<8x64xf32>, vector<8x64xf32> -> vector<8x128xf32>
    %c0_15 = arith.constant 0 : index
    %c0_16 = arith.constant 0 : index
    %53 = vector.load %arg6[%c0_15, %c0_16] : memref<8x384xf32, #tpu.memory_space<vmem>>, vector<8x128xf32>
    tpu.vector_store %arg6[%c0_15, %c0_16], %52 {strides = array<i32>} : memref<8x384xf32, #tpu.memory_space<vmem>>, vector<8x128xf32>,
    %54 = vector.extract_strided_slice %5 {offsets = [0, 128], sizes = [8, 64], strides = [1, 1]} : vector<8x1152xbf16> to vector<8x64xbf16>
    %55 = vector.extract_strided_slice %5 {offsets = [0, 192], sizes = [8, 64], strides = [1, 1]} : vector<8x1152xbf16> to vector<8x64xbf16>
    %56 = vector.extract_strided_slice %5 {offsets = [0, 512], sizes = [8, 64], strides = [1, 1]} : vector<8x1152xbf16> to vector<8x64xbf16>
    %57 = vector.extract_strided_slice %5 {offsets = [0, 576], sizes = [8, 64], strides = [1, 1]} : vector<8x1152xbf16> to vector<8x64xbf16>
    %58 = vector.extract_strided_slice %5 {offsets = [0, 896], sizes = [8, 64], strides = [1, 1]} : vector<8x1152xbf16> to vector<8x64xbf16>
    %59 = vector.extract_strided_slice %5 {offsets = [0, 960], sizes = [8, 64], strides = [1, 1]} : vector<8x1152xbf16> to vector<8x64xbf16>
    %cst_17 = arith.constant dense<0.000000e+00> : vector<8x8xf32>
    %60 = tpu.matmul %54, %56, %cst_17 {dimension_numbers = #tpu.dot_dimension_numbers<[1], [1], [0], [0], [0, 0, 1, 0], [], []>} : vector<8x64xbf16>, vector<8x64xbf16>, vector<8x8xf32> -> vector<8x8xf32>
    %61 = tpu.iota {dimensions = array<i32: 0>} : vector<8x8xi32>
    %c0_i32_18 = arith.constant 0 : i32
    %62 = vector.broadcast %c0_i32_18 : i32 to vector<8x8xi32>
    %63 = arith.addi %61, %62 : vector<8x8xi32>
    %64 = tpu.iota {dimensions = array<i32: 1>} : vector<8x8xi32>
    %65 = arith.cmpi sle, %64, %63 : vector<8x8xi32>
    %cst_19 = arith.constant -1.000000e+30 : f32
    %66 = vector.broadcast %cst_19 : f32 to vector<8x8xf32>
    %67 = arith.select %65, %60, %66 : vector<8x8xi1>, vector<8x8xf32>
    %cst_20 = arith.constant dense<0xFF800000> : vector<8xf32>
    %68 = vector.multi_reduction <maximumf>, %67, %cst_20 [1] : vector<8x8xf32> to vector<8xf32>
    %69 = vector.shape_cast %68 : vector<8xf32> to vector<8x1xf32>
    %70 = vector.broadcast %69 : vector<8x1xf32> to vector<8x8xf32>
    %71 = arith.subf %67, %70 : vector<8x8xf32>
    %72 = math.exp %71 : vector<8x8xf32>
    %cst_21 = arith.constant dense<0.000000e+00> : vector<8xf32>
    %73 = vector.multi_reduction <add>, %72, %cst_21 [1] : vector<8x8xf32> to vector<8xf32>
    %74 = vector.shape_cast %73 : vector<8xf32> to vector<8x1xf32>
    %75 = arith.truncf %72 : vector<8x8xf32> to vector<8x8xbf16>
    %cst_22 = arith.constant dense<0.000000e+00> : vector<8x64xf32>
    %76 = tpu.matmul %75, %58, %cst_22 {dimension_numbers = #tpu.dot_dimension_numbers<[1], [0], [0], [1], [0, 0, 1, 1], [], []>} : vector<8x8xbf16>, vector<8x64xbf16>, vector<8x64xf32> -> vector<8x64xf32>
    %77 = tpu.reciprocal %74 {approx = true} : vector<8x1xf32> -> vector<8x1xf32>
    %78 = vector.broadcast %77 : vector<8x1xf32> to vector<8x64xf32>
    %79 = arith.mulf %76, %78 : vector<8x64xf32>
    %cst_23 = arith.constant dense<0.000000e+00> : vector<8x8xf32>
    %80 = tpu.matmul %55, %57, %cst_23 {dimension_numbers = #tpu.dot_dimension_numbers<[1], [1], [0], [0], [0, 0, 1, 0], [], []>} : vector<8x64xbf16>, vector<8x64xbf16>, vector<8x8xf32> -> vector<8x8xf32>
    %81 = tpu.iota {dimensions = array<i32: 0>} : vector<8x8xi32>
    %c0_i32_24 = arith.constant 0 : i32
    %82 = vector.broadcast %c0_i32_24 : i32 to vector<8x8xi32>
    %83 = arith.addi %81, %82 : vector<8x8xi32>
    %84 = tpu.iota {dimensions = array<i32: 1>} : vector<8x8xi32>
    %85 = arith.cmpi sle, %84, %83 : vector<8x8xi32>
    %cst_25 = arith.constant -1.000000e+30 : f32
    %86 = vector.broadcast %cst_25 : f32 to vector<8x8xf32>
    %87 = arith.select %85, %80, %86 : vector<8x8xi1>, vector<8x8xf32>
    %cst_26 = arith.constant dense<0xFF800000> : vector<8xf32>
    %88 = vector.multi_reduction <maximumf>, %87, %cst_26 [1] : vector<8x8xf32> to vector<8xf32>
    %89 = vector.shape_cast %88 : vector<8xf32> to vector<8x1xf32>
    %90 = vector.broadcast %89 : vector<8x1xf32> to vector<8x8xf32>
    %91 = arith.subf %87, %90 : vector<8x8xf32>
    %92 = math.exp %91 : vector<8x8xf32>
    %cst_27 = arith.constant dense<0.000000e+00> : vector<8xf32>
    %93 = vector.multi_reduction <add>, %92, %cst_27 [1] : vector<8x8xf32> to vector<8xf32>
    %94 = vector.shape_cast %93 : vector<8xf32> to vector<8x1xf32>
    %95 = arith.truncf %92 : vector<8x8xf32> to vector<8x8xbf16>
    %cst_28 = arith.constant dense<0.000000e+00> : vector<8x64xf32>
    %96 = tpu.matmul %95, %59, %cst_28 {dimension_numbers = #tpu.dot_dimension_numbers<[1], [0], [0], [1], [0, 0, 1, 1], [], []>} : vector<8x8xbf16>, vector<8x64xbf16>, vector<8x64xf32> -> vector<8x64xf32>
    %97 = tpu.reciprocal %94 {approx = true} : vector<8x1xf32> -> vector<8x1xf32>
    %98 = vector.broadcast %97 : vector<8x1xf32> to vector<8x64xf32>
    %99 = arith.mulf %96, %98 : vector<8x64xf32>
    %100 = tpu.concatenate %79, %99 in 1 : vector<8x64xf32>, vector<8x64xf32> -> vector<8x128xf32>
    %c0_29 = arith.constant 0 : index
    %c128 = arith.constant 128 : index
    %101 = vector.load %arg6[%c0_29, %c128] : memref<8x384xf32, #tpu.memory_space<vmem>>, vector<8x128xf32>
    tpu.vector_store %arg6[%c0_29, %c128], %100 {strides = array<i32>} : memref<8x384xf32, #tpu.memory_space<vmem>>, vector<8x128xf32>,
    %102 = vector.extract_strided_slice %5 {offsets = [0, 256], sizes = [8, 64], strides = [1, 1]} : vector<8x1152xbf16> to vector<8x64xbf16>
    %103 = vector.extract_strided_slice %5 {offsets = [0, 320], sizes = [8, 64], strides = [1, 1]} : vector<8x1152xbf16> to vector<8x64xbf16>
    %104 = vector.extract_strided_slice %5 {offsets = [0, 640], sizes = [8, 64], strides = [1, 1]} : vector<8x1152xbf16> to vector<8x64xbf16>
    %105 = vector.extract_strided_slice %5 {offsets = [0, 704], sizes = [8, 64], strides = [1, 1]} : vector<8x1152xbf16> to vector<8x64xbf16>
    %106 = vector.extract_strided_slice %5 {offsets = [0, 1024], sizes = [8, 64], strides = [1, 1]} : vector<8x1152xbf16> to vector<8x64xbf16>
    %107 = vector.extract_strided_slice %5 {offsets = [0, 1088], sizes = [8, 64], strides = [1, 1]} : vector<8x1152xbf16> to vector<8x64xbf16>
    %cst_30 = arith.constant dense<0.000000e+00> : vector<8x8xf32>
    %108 = tpu.matmul %102, %104, %cst_30 {dimension_numbers = #tpu.dot_dimension_numbers<[1], [1], [0], [0], [0, 0, 1, 0], [], []>} : vector<8x64xbf16>, vector<8x64xbf16>, vector<8x8xf32> -> vector<8x8xf32>
    %109 = tpu.iota {dimensions = array<i32: 0>} : vector<8x8xi32>
    %c0_i32_31 = arith.constant 0 : i32
    %110 = vector.broadcast %c0_i32_31 : i32 to vector<8x8xi32>
    %111 = arith.addi %109, %110 : vector<8x8xi32>
    %112 = tpu.iota {dimensions = array<i32: 1>} : vector<8x8xi32>
    %113 = arith.cmpi sle, %112, %111 : vector<8x8xi32>
    %cst_32 = arith.constant -1.000000e+30 : f32
    %114 = vector.broadcast %cst_32 : f32 to vector<8x8xf32>
    %115 = arith.select %113, %108, %114 : vector<8x8xi1>, vector<8x8xf32>
    %cst_33 = arith.constant dense<0xFF800000> : vector<8xf32>
    %116 = vector.multi_reduction <maximumf>, %115, %cst_33 [1] : vector<8x8xf32> to vector<8xf32>
    %117 = vector.shape_cast %116 : vector<8xf32> to vector<8x1xf32>
    %118 = vector.broadcast %117 : vector<8x1xf32> to vector<8x8xf32>
    %119 = arith.subf %115, %118 : vector<8x8xf32>
    %120 = math.exp %119 : vector<8x8xf32>
    %cst_34 = arith.constant dense<0.000000e+00> : vector<8xf32>
    %121 = vector.multi_reduction <add>, %120, %cst_34 [1] : vector<8x8xf32> to vector<8xf32>
    %122 = vector.shape_cast %121 : vector<8xf32> to vector<8x1xf32>
    %123 = arith.truncf %120 : vector<8x8xf32> to vector<8x8xbf16>
    %cst_35 = arith.constant dense<0.000000e+00> : vector<8x64xf32>
    %124 = tpu.matmul %123, %106, %cst_35 {dimension_numbers = #tpu.dot_dimension_numbers<[1], [0], [0], [1], [0, 0, 1, 1], [], []>} : vector<8x8xbf16>, vector<8x64xbf16>, vector<8x64xf32> -> vector<8x64xf32>
    %125 = tpu.reciprocal %122 {approx = true} : vector<8x1xf32> -> vector<8x1xf32>
    %126 = vector.broadcast %125 : vector<8x1xf32> to vector<8x64xf32>
    %127 = arith.mulf %124, %126 : vector<8x64xf32>
    %cst_36 = arith.constant dense<0.000000e+00> : vector<8x8xf32>
    %128 = tpu.matmul %103, %105, %cst_36 {dimension_numbers = #tpu.dot_dimension_numbers<[1], [1], [0], [0], [0, 0, 1, 0], [], []>} : vector<8x64xbf16>, vector<8x64xbf16>, vector<8x8xf32> -> vector<8x8xf32>
    %129 = tpu.iota {dimensions = array<i32: 0>} : vector<8x8xi32>
    %c0_i32_37 = arith.constant 0 : i32
    %130 = vector.broadcast %c0_i32_37 : i32 to vector<8x8xi32>
    %131 = arith.addi %129, %130 : vector<8x8xi32>
    %132 = tpu.iota {dimensions = array<i32: 1>} : vector<8x8xi32>
    %133 = arith.cmpi sle, %132, %131 : vector<8x8xi32>
    %cst_38 = arith.constant -1.000000e+30 : f32
    %134 = vector.broadcast %cst_38 : f32 to vector<8x8xf32>
    %135 = arith.select %133, %128, %134 : vector<8x8xi1>, vector<8x8xf32>
    %cst_39 = arith.constant dense<0xFF800000> : vector<8xf32>
    %136 = vector.multi_reduction <maximumf>, %135, %cst_39 [1] : vector<8x8xf32> to vector<8xf32>
    %137 = vector.shape_cast %136 : vector<8xf32> to vector<8x1xf32>
    %138 = vector.broadcast %137 : vector<8x1xf32> to vector<8x8xf32>
    %139 = arith.subf %135, %138 : vector<8x8xf32>
    %140 = math.exp %139 : vector<8x8xf32>
    %cst_40 = arith.constant dense<0.000000e+00> : vector<8xf32>
    %141 = vector.multi_reduction <add>, %140, %cst_40 [1] : vector<8x8xf32> to vector<8xf32>
    %142 = vector.shape_cast %141 : vector<8xf32> to vector<8x1xf32>
    %143 = arith.truncf %140 : vector<8x8xf32> to vector<8x8xbf16>
    %cst_41 = arith.constant dense<0.000000e+00> : vector<8x64xf32>
    %144 = tpu.matmul %143, %107, %cst_41 {dimension_numbers = #tpu.dot_dimension_numbers<[1], [0], [0], [1], [0, 0, 1, 1], [], []>} : vector<8x8xbf16>, vector<8x64xbf16>, vector<8x64xf32> -> vector<8x64xf32>
    %145 = tpu.reciprocal %142 {approx = true} : vector<8x1xf32> -> vector<8x1xf32>
    %146 = vector.broadcast %145 : vector<8x1xf32> to vector<8x64xf32>
    %147 = arith.mulf %144, %146 : vector<8x64xf32>
    %148 = tpu.concatenate %127, %147 in 1 : vector<8x64xf32>, vector<8x64xf32> -> vector<8x128xf32>
    %c0_42 = arith.constant 0 : index
    %c256 = arith.constant 256 : index
    %149 = vector.load %arg6[%c0_42, %c256] : memref<8x384xf32, #tpu.memory_space<vmem>>, vector<8x128xf32>
    tpu.vector_store %arg6[%c0_42, %c256], %148 {strides = array<i32>} : memref<8x384xf32, #tpu.memory_space<vmem>>, vector<8x128xf32>,
    %c0_43 = arith.constant 0 : index
    %c0_44 = arith.constant 0 : index
    %150 = vector.load %arg6[%c0_43, %c0_44] : memref<8x384xf32, #tpu.memory_space<vmem>>, vector<8x384xf32>
    %151 = arith.truncf %150 : vector<8x384xf32> to vector<8x384xbf16>
    %c0_45 = arith.constant 0 : index
    %c0_46 = arith.constant 0 : index
    %152 = vector.load %arg3[%c0_45, %c0_46] : memref<384x384xbf16, #tpu.memory_space<vmem>>, vector<384x384xbf16>
    %cst_47 = arith.constant dense<0.000000e+00> : vector<8x384xf32>
    %153 = tpu.matmul %151, %152, %cst_47 {dimension_numbers = #tpu.dot_dimension_numbers<[1], [0], [0], [1], [0, 0, 1, 1], [], []>} : vector<8x384xbf16>, vector<384x384xbf16>, vector<8x384xf32> -> vector<8x384xf32>
    %c0_48 = arith.constant 0 : index
    %c0_49 = arith.constant 0 : index
    %154 = vector.load %arg4[%c0_48, %c0_49] : memref<1x384xf32, #tpu.memory_space<vmem>>, vector<1x384xf32>
    %155 = vector.broadcast %154 : vector<1x384xf32> to vector<8x384xf32>
    %156 = arith.addf %153, %155 : vector<8x384xf32>
    %c0_50 = arith.constant 0 : index
    %c0_51 = arith.constant 0 : index
    %c0_52 = arith.constant 0 : index
    %157 = vector.load %arg5[%c0_50, %c0_51, %c0_52] : memref<1x8x384xf32, #tpu.memory_space<vmem>>, vector<1x8x384xf32>
    %158 = vector.shape_cast %157 : vector<1x8x384xf32> to vector<8x384xf32>
    %159 = vector.shape_cast %156 : vector<8x384xf32> to vector<1x8x384xf32>
    tpu.vector_store %arg5[%c0_50, %c0_51, %c0_52], %159 {strides = array<i32>} : memref<1x8x384xf32, #tpu.memory_space<vmem>>, vector<1x8x384xf32>,
    return
  }
  func.func @transform_0(%arg0: i32) -> (i32, i32, i32) {
    %c0_i32 = arith.constant 0 : i32
    %c0_i32_0 = arith.constant 0 : i32
    %c0_i32_1 = arith.constant 0 : i32
    return %arg0, %c0_i32, %c0_i32_0 : i32, i32, i32
  }
  func.func @transform_1(%arg0: i32) -> (i32, i32) {
    %c0_i32 = arith.constant 0 : i32
    %c0_i32_0 = arith.constant 0 : i32
    %c0_i32_1 = arith.constant 0 : i32
    return %c0_i32, %c0_i32_0 : i32, i32
  }
  func.func @transform_2(%arg0: i32) -> (i32, i32) {
    %c0_i32 = arith.constant 0 : i32
    %c0_i32_0 = arith.constant 0 : i32
    %c0_i32_1 = arith.constant 0 : i32
    return %c0_i32, %c0_i32_0 : i32, i32
  }
  func.func @transform_3(%arg0: i32) -> (i32, i32) {
    %c0_i32 = arith.constant 0 : i32
    %c0_i32_0 = arith.constant 0 : i32
    %c0_i32_1 = arith.constant 0 : i32
    return %c0_i32, %c0_i32_0 : i32, i32
  }
  func.func @transform_4(%arg0: i32) -> (i32, i32, i32) {
    %c0_i32 = arith.constant 0 : i32
    %c0_i32_0 = arith.constant 0 : i32
    %c0_i32_1 = arith.constant 0 : i32
    return %arg0, %c0_i32, %c0_i32_0 : i32, i32, i32
  }
}

</mosaic_0001>

<bundles_post_ra>
// kernel: tpu_custom_call.1
= control target key start
LH: loop header
LB: loop body
LE: loop exit
PB: predicated region body
PF: predicated region fallthrough
CT: control target
= control target key end

     0   :  { %9 = vsyncpa [#allocation4], 0  ;;  %s5042_s0 = inlined_call_operand.hbm [shape: f32[2,8,384], index: 0, kind: input, shape index: {}]   ;;  %s5043_s1 = inlined_call_operand.hbm [shape: bf16[384,1152], index: 1, kind: input, shape index: {}]   ;;  %s5044_s2 = inlined_call_operand.hbm [shape: bf16[384,384], index: 2, kind: input, shape index: {}]   ;;  %s5045_s3 = inlined_call_operand.vmem [shape: f32[1,384], index: 3, kind: input, shape index: {}]   ;;  %s5046_s4 = inlined_call_operand.hbm [shape: f32[2,8,384], index: 4, kind: output, shape index: {}]  }
   0x1   :  { %11 = vsyncpa [#allocation4 + $0x1], 0 }
   0x2   :  { %12 = vsyncpa [#allocation7], 0 }
   0x3   :  { %13 = vsyncpa [#allocation5], 0 }
   0x4   :  { %15 = vsyncpa [#allocation5 + $0x1], 0  ;;  %s4679_s15 = smov 0   ;;  %s4681_s16 = smov 0  }
   0x5   :  { %s4683_s17 = smov 0   ;;  %s4685_s18 = smov 0  }
   0x6 LB: > { %s4700_s19 = sadd.s32 4294967295, %s4640_s18   ;;  %s3466_s20 = sadd.s32 4294967294, %s4640_s18   ;;  %s4640_s18 = sphi %s4685_s18, %s5070_s18   ;;  %s4636_s17 = sphi %s4683_s17, %s5069_s17   ;;  %s4632_s16 = sphi %s4681_s16, %s5068_s16   ;;  %s4628_s15 = sphi %s4679_s15, %s5067_s15  }
   0x7   : > { %p41_p0 = scmp.ne.s32.totalorder %s4632_s16, %s4628_s15  ;;  %p5047_p1 = scmp.eq.s32.totalorder %s4700_s19, 0 }
   0x8   : > { %p134_p3 = scmp.eq.s32.totalorder %s3466_s20, 1  ;;  %p3467_p5 = scmp.ge.s32.totalorder %s4640_s18, 1 }
   0x9   : > { %p4709_p4 = por %p5047_p1, %p41_p0  ;;  %p141_p7 = scmp.lt.s32.totalorder %s4640_s18, 3 }
   0xa   : > { %p4714_p6 = por %p134_p3, %p41_p0  ;;  %s4642_s24 = smov [#allocation6]  }
   0xb   : > { %s5051_s21 = scalar_select %p4709_p4, 1, 0 }
   0xc   : > { %s5052_s22 = scalar_select %p4714_p6, 1, 0 }
   0xd   : > { %p4719_p8 = pnand %p3467_p5, %p141_p7  ;;  %s153_s25 = sshll.u32 %s4642_s24, 4  ;;  %s154_s25 = int_to_ptr.vmem [resolvable:$true] %s153_s25 }
   0xe   : > { %s4643_s27 = smov [#allocation8]   ;;  %s4503_s29 = scalar_lea.vmem %s154_s25, 27648 }
   0xf   : > { %s5053_s23 = scalar_select %p4719_p8, 1, 0 }
  0x10   : > { %p3992_p9 = pneg %p4719_p8  ;;  %s166_s28 = sshll.u32 %s4643_s27, 4  ;;  %s167_s28 = int_to_ptr.vmem [resolvable:$true] %s166_s28 }
  0x11   : > { %p4504_p13 = scmp.ne.s32.totalorder %s154_s25, %s4503_s29  ;;  %p4511_p5 = scmp.lt.s32.totalorder %s154_s25, %s154_s25 }
  0x12   : > { %p4728_p11 = pnand %p3992_p9, %p5047_p1  ;;  %p4512_p7 = scmp.lt.s32.totalorder %s4503_s29, %s4503_s29 }
  0x14   : > { %p4494_p12 = pneg %p4728_p11  ;;  %p4513_p10 = por %p4512_p7, %p4511_p5 }
  0x16   : > { %p4506_p0 = pnand %p4504_p13, %p4494_p12 }
  0x18   : > { %p4507_p3 = pneg %p4506_p0 }
  0x1a   : > { %p4514_p9 = pnand %p4513_p10, %p4507_p3 }
  0x1c   : > { %4517 = shalt.err (!%p4514_p9)
}
  0x1d   : > { %s4644_s30 = smov 576   ;;  %s4645_s5 = smov 36  }
  0x1e   : > { %3995 = dma.hbm_to_vmem [thread:$0]  (!%p4728_p11), %s5043_s1, 27648, %s154_s25, [#allocation7], %s4644_s30, %s4644_s30, %s4645_s5  }
  0x1f   : > { %s4529_s8 = scalar_lea.vmem %s167_s28, 9216  ;;  %p4537_p2 = scmp.lt.s32.totalorder %s167_s28, %s167_s28 }
  0x20   : > { %p4530_p1 = scmp.ne.s32.totalorder %s167_s28, %s4529_s8  ;;  %p4538_p6 = scmp.lt.s32.totalorder %s4529_s8, %s4529_s8 }
  0x22   : > { %p4532_p13 = pnand %p4530_p1, %p4494_p12  ;;  %p4539_p5 = por %p4538_p6, %p4537_p2 }
  0x24   : > { %p4533_p0 = pneg %p4532_p13 }
  0x26   : > { %p4540_p10 = pnand %p4539_p5, %p4533_p0 }
  0x28   : > { %4543 = shalt.err (!%p4540_p10)
}
  0x29   : > { %s4646_s9 = smov 192   ;;  %s4647_s10 = smov 12  }
  0x2a   : > { %3998 = dma.hbm_to_vmem [thread:$0]  (!%p4728_p11), %s5044_s2, 9216, %s167_s28, [#allocation7], %s4646_s9, %s4646_s9, %s4647_s10  }
  0x2b   : > { %s4751_s13 = sadd.s32 1, %s4640_s18   ;;  %s28_s20 = sadd.s32 1, %s4636_s17 }
  0x2c   : > { %s25_s14 = ssub.s32 %s4640_s18, %s4751_s13  ;;  %p35_p2 = scmp.ne.s32.totalorder %s4636_s17, %s4632_s16 }
  0x2d   : > { %p26_p1 = scmp.eq.s32.totalorder %s25_s14, 0  ;;  %p36_p6 = scmp.eq.s32.totalorder %s4640_s18, 0 }
  0x2e   : > { %p5055_p3 = scmp.eq.s32.totalorder %s4700_s19, 1  ;;  %p4009_p9 = scmp.lt.s32.totalorder %s4640_s18, 2 }
  0x2f   : > { %s4760_s24 = scalar_select %p26_p1, %s4636_s17, %s28_s20  }
  0x30   : > { %p37_p12 = por %p36_p6, %p35_p2  ;;  %p4764_p7 = por %p5055_p3, %p35_p2 }
  0x31   : > { %s183_s26 = sand.u32 1, %s4636_s17   ;;  %s3977_s28 = smul.u32 384, %s4640_s18 }
  0x32   : > { %s5056_s25 = scalar_select %p4764_p7, 1, 0 }
  0x33   : > { %s3976_s27 = smul.u32 24, %s183_s26  ;;  %p4771_p11 = pnand %p4009_p9, %p37_p12 }
  0x34   : > { %s4778_s6 = scalar_lea.hbm %s5042_s0, %s3977_s28  ;;  %s184_s9 = scalar_lea.sflag [#allocation4], %s183_s26 }
  0x35   : > { %s187_s7 = scalar_lea.vmem [#allocation3], %s3976_s27  ;;  %s4544_s10 = scalar_lea.hbm %s4778_s6, 384 }
  0x36   : > { %s195_s8 = sshll.u32 %s187_s7, 4  ;;  %p4545_p13 = scmp.ne.s32.totalorder %s4778_s6, %s4544_s10  ;;  %s196_s8 = int_to_ptr.vmem [resolvable:$true] %s195_s8 }
  0x37   : > { %p4546_p0 = pneg %p4771_p11  ;;  %s4549_s14 = scalar_lea.hbm %s5042_s0, 768 }
  0x38   : > { %p4550_p1 = scmp.lt.s32.totalorder %s4778_s6, %s5042_s0  ;;  %p4551_p2 = scmp.lt.s32.totalorder %s4549_s14, %s4544_s10 }
  0x39   : > { %p4547_p5 = pnand %p4546_p0, %p4545_p13 }
  0x3a   : > { %p4552_p6 = por %p4551_p2, %p4550_p1 }
  0x3b   : > { %p4548_p10 = pneg %p4547_p5 }
  0x3d   : > { %p4553_p12 = pnand %p4552_p6, %p4548_p10 }
  0x3f   : > { %4556 = shalt.err (!%p4553_p12)
}
  0x40   : > { %s4557_s27 = scalar_lea.vmem %s196_s8, 384  ;;  %s4648_s26 = smov [#allocation3]  }
  0x41   : > { %p4558_p3 = scmp.ne.s32.totalorder %s196_s8, %s4557_s27  ;;  %s4562_s30 = sshll.u32 %s4648_s26, 4  ;;  %s4563_s30 = int_to_ptr.vmem [resolvable:$false] %s4562_s30 }
  0x42   : > { %s4564_s5 = scalar_lea.vmem %s4563_s30, 768  ;;  %p4565_p13 = scmp.lt.s32.totalorder %s196_s8, %s4563_s30 }
  0x43   : > { %p4560_p9 = pnand %p4558_p3, %p4546_p0  ;;  %p4566_p5 = scmp.lt.s32.totalorder %s4564_s5, %s4557_s27 }
  0x45   : > { %p4561_p7 = pneg %p4560_p9  ;;  %p4567_p4 = por %p4566_p5, %p4565_p13 }
  0x47   : > { %p4568_p8 = pnand %p4567_p4, %p4561_p7 }
  0x49   : > { %4571 = shalt.err (!%p4568_p8)
}
  0x4a   : > { %4002 = dma.hbm_to_vmem [thread:$0]  (!%p4771_p11), %s4778_s6, 384, %s196_s8, %s184_s9  }
  0x4b   : > { %p5058_p10 = scmp.ne.s32.totalorder %s5053_s23, 0 }
  0x4c   : > { %s4797_s7 = sand.u32 (!%p5058_p10), 1, %s4632_s16   ;;  %p5059_p4 = scmp.ne.s32.totalorder (!%p5058_p10), %s5051_s21, 0 }
  0x4d   : > { %204 = sbr.rel (%p5058_p10) target bundleno = 1697 (0x6a1), region = 36  ;;  %s207_s11 = scalar_lea.sflag (!%p5058_p10), [#allocation4], %s4797_s7 }
  0x4e   : > { %s3978_s10 = smul.u32 (!%p5058_p10), 24, %s4797_s7 }
  0x50   : > { %s4803_s12 = scalar_lea.vmem (!%p5058_p10), [#allocation3], %s3978_s10 }
  0x52   : > { %4615 = dma.done.wait (%p5059_p4), %s207_s11, 384  }
  0x53   : > { %4617 = vsyncadd (%p5059_p4), %s207_s11, 4294966912  ;;  %p5060_p8 = scmp.eq.s32.totalorder %s4700_s19, 0 }
  0x55   : > { %4619 = dma.done.wait (%p5060_p8), [#allocation7], 36864   ;;  %p5061_p7 = pmov %p5060_p8 }
  0x56   : > { %v4649_v0 = vmov 0   ;;  %v4060_v1 = vld [vmem:[#allocation6 + $0x1fc] ss:$36 sps:$4 sm:$0xff]   ;;  %v4066_v5 = vld [vmem:[#allocation6 + $0x1b4] ss:$36 sps:$4 sm:$0xff]   ;;  %vm4651_vm0 = vmmov 0  }
  0x57   : > { %4621 = vsyncadd (%p5061_p7), [#allocation7], 4294930432  ;;  %1667 = vmatprep.mubr.bf16.mxu1 %v4649_v0  ;;  %v4062_v2 = vld [vmem:[#allocation6 + $0x67c] ss:$36 sps:$4 sm:$0xff]   ;;  %1594 = vmatprep.subr.bf16.mxu0 %v4060_v1  ;;  %v4068_v6 = vld [vmem:[#allocation6 + $0x634] ss:$36 sps:$4 sm:$0xff]  }
  0x58   : > { %v4064_v3 = vld [vmem:[#allocation6 + $0x1f8] ss:$36 sps:$4 sm:$0xff]   ;;  %1635 = vmatprep.subr.bf16.mxu1 %v4062_v2  ;;  %v4070_v7 = vld [vmem:[#allocation6 + $0x1b0] ss:$36 sps:$4 sm:$0xff]   ;;  %v4076_v11 = vld [vmem:[#allocation6 + $0x168] ss:$36 sps:$4 sm:$0xff]  }
  0x59   : > { %v4065_v4 = vld [vmem:[#allocation6 + $0x678] ss:$36 sps:$4 sm:$0xff]   ;;  %1595 = vmatpush1.bf16.msra.mxu0 %v4064_v3  ;;  %v4071_v8 = vld [vmem:[#allocation6 + $0x630] ss:$36 sps:$4 sm:$0xff]   ;;  %v4077_v12 = vld [vmem:[#allocation6 + $0x5e8] ss:$36 sps:$4 sm:$0xff]  }
  0x5a   : > { %1636 = vmatpush1.bf16.msra.mxu1 %v4065_v4  ;;  %1596 = vmatprep.subr.bf16.mxu0 %v4066_v5  ;;  %v4072_v9 = vld [vmem:[#allocation6 + $0x16c] ss:$36 sps:$4 sm:$0xff]   ;;  %v4078_v13 = vld [vmem:[#allocation6 + $0x124] ss:$36 sps:$4 sm:$0xff]   ;;  %v4084_v17 = vld [vmem:[#allocation6 + $0xdc] ss:$36 sps:$4 sm:$0xff]  }
  0x5b   : > { %1637 = vmatprep.subr.bf16.mxu1 %v4068_v6  ;;  %v4074_v10 = vld [vmem:[#allocation6 + $0x5ec] ss:$36 sps:$4 sm:$0xff]   ;;  %v4080_v14 = vld [vmem:[#allocation6 + $0x5a4] ss:$36 sps:$4 sm:$0xff]   ;;  %v4086_v18 = vld [vmem:[#allocation6 + $0x55c] ss:$36 sps:$4 sm:$0xff]  }
  0x5c   : > { %v4082_v15 = vld [vmem:[#allocation6 + $0x120] ss:$36 sps:$4 sm:$0xff]   ;;  %v4088_v19 = vld [vmem:[#allocation6 + $0xd8] ss:$36 sps:$4 sm:$0xff]   ;;  %v4094_v23 = vld [vmem:[#allocation6 + $0x90] ss:$36 sps:$4 sm:$0xff]  }
  0x5d   : > { %1597 = vmatpush1.bf16.msra.mxu0 %v4070_v7  ;;  %v4083_v16 = vld [vmem:[#allocation6 + $0x5a0] ss:$36 sps:$4 sm:$0xff]   ;;  %v4089_v20 = vld [vmem:[#allocation6 + $0x558] ss:$36 sps:$4 sm:$0xff]   ;;  %v4095_v24 = vld [vmem:[#allocation6 + $0x510] ss:$36 sps:$4 sm:$0xff]  }
  0x5e   : > { %1638 = vmatpush1.bf16.msra.mxu1 %v4071_v8  ;;  %1598 = vmatprep.subr.bf16.mxu0 %v4072_v9  ;;  %v4090_v21 = vld [vmem:[#allocation6 + $0x94] ss:$36 sps:$4 sm:$0xff]   ;;  %v4096_v25 = vld [vmem:[#allocation6 + $0x4c] ss:$36 sps:$4 sm:$0xff]   ;;  %v4102_v29 = vld [vmem:[#allocation6 + $0x4] ss:$36 sps:$4 sm:$0xff]  }
  0x5f   : > { %1639 = vmatprep.subr.bf16.mxu1 %v4074_v10  ;;  %v4092_v22 = vld [vmem:[#allocation6 + $0x514] ss:$36 sps:$4 sm:$0xff]   ;;  %v4098_v26 = vld [vmem:[#allocation6 + $0x4cc] ss:$36 sps:$4 sm:$0xff]   ;;  %v4104_v30 = vld [vmem:[#allocation6 + $0x484] ss:$36 sps:$4 sm:$0xff]  }
  0x60   : > { %v4100_v27 = vld [vmem:[#allocation6 + $0x48] ss:$36 sps:$4 sm:$0xff]   ;;  %v4106_v31 = vld [vmem:[#allocation6] ss:$36 sps:$4 sm:$0xff]   ;;  %v4113_v38 = vld [vmem:[#allocation6 + $0x438] ss:$36 sps:$4 sm:$0xff]  }
  0x61   : > { %1599 = vmatpush1.bf16.msra.mxu0 %v4076_v11  ;;  %v4101_v28 = vld [vmem:[#allocation6 + $0x4c8] ss:$36 sps:$4 sm:$0xff]   ;;  %v4107_v32 = vld [vmem:[#allocation6 + $0x480] ss:$36 sps:$4 sm:$0xff]   ;;  %v4114_v39 = vld [vmem:[#allocation6 + $0x3f4] ss:$36 sps:$4 sm:$0xff]  }
  0x62   : > { %1640 = vmatpush1.bf16.msra.mxu1 %v4077_v12  ;;  %1600 = vmatprep.subr.bf16.mxu0 %v4078_v13  ;;  %v246_v33 = vld [vmem:[%s4803_s12 + $0x10] sm:$0xff]  ;;  %v4119_v42 = vld [vmem:[#allocation6 + $0x3f0] ss:$36 sps:$4 sm:$0xff]   ;;  %v4125_v46 = vld [vmem:[#allocation6 + $0x3a8] ss:$36 sps:$4 sm:$0xff]   ;;  %s4652_s21 = smov 64  }
  0x63   : > { %1641 = vmatprep.subr.bf16.mxu1 %v4080_v14  ;;  %v4108_v34 = vld [vmem:[#allocation6 + $0x43c] ss:$36 sps:$4 sm:$0xff]   ;;  %v4112_v35 = vld [vmem:[#allocation6 + $0x204] ss:$36 sps:$4 sm:$0xff]   ;;  %v4815_v36 = vpack.c.bf16 %v246_v33, %v246_v33  ;;  %v4120_v43 = vld [vmem:[#allocation6 + $0x3ac] ss:$36 sps:$4 sm:$0xff]  }
  0x64   : > { %v4110_v37 = vld [vmem:[#allocation6 + $0x200] ss:$36 sps:$4 sm:$0xff]   ;;  %v4116_v41 = vld [vmem:[#allocation6 + $0x1b8] ss:$36 sps:$4 sm:$0xff]   ;;  %v4122_v45 = vld [vmem:[#allocation6 + $0x170] ss:$36 sps:$4 sm:$0xff]  }
  0x65   : > { %1601 = vmatpush1.bf16.msra.mxu0 %v4082_v15  ;;  %v4118_v40 = vld [vmem:[#allocation6 + $0x1bc] ss:$36 sps:$4 sm:$0xff]   ;;  %v4124_v44 = vld [vmem:[#allocation6 + $0x174] ss:$36 sps:$4 sm:$0xff]   ;;  %v4126_v47 = vld [vmem:[#allocation6 + $0x364] ss:$36 sps:$4 sm:$0xff]  }
  0x66   : > { %1642 = vmatpush1.bf16.msra.mxu1 %v4083_v16  ;;  %1602 = vmatprep.subr.bf16.mxu0 %v4084_v17  ;;  %v4130_v48 = vld [vmem:[#allocation6 + $0x12c] ss:$36 sps:$4 sm:$0xff]   ;;  %v4131_v51 = vld [vmem:[#allocation6 + $0x360] ss:$36 sps:$4 sm:$0xff]   ;;  %v4137_v56 = vld [vmem:[#allocation6 + $0x318] ss:$36 sps:$4 sm:$0xff]  }
  0x67   : > { %1643 = vmatprep.subr.bf16.mxu1 %v4086_v18  ;;  %v4128_v49 = vld [vmem:[#allocation6 + $0x128] ss:$36 sps:$4 sm:$0xff]   ;;  %v245_v50 = vld [vmem:[%s4803_s12 + $0x8] sm:$0xff]  ;;  %v4134_v55 = vld [vmem:[#allocation6 + $0xe0] ss:$36 sps:$4 sm:$0xff]   ;;  %vm2011_vm1 = vcmask 523264  }
  0x68   : > { %v4132_v52 = vld [vmem:[#allocation6 + $0x31c] ss:$36 sps:$4 sm:$0xff]   ;;  %v4819_v53 = vpack.c.bf16 %v245_v50, %v245_v50  ;;  %v4136_v54 = vld [vmem:[#allocation6 + $0xe4] ss:$36 sps:$4 sm:$0xff]   ;;  %v4138_v57 = vld [vmem:[#allocation6 + $0x2d4] ss:$36 sps:$4 sm:$0xff]  }
  0x69   : > { %1603 = vmatpush1.bf16.msra.mxu0 %v4088_v19  ;;  %v4142_v58 = vld [vmem:[#allocation6 + $0x9c] ss:$36 sps:$4 sm:$0xff]   ;;  %v4143_v60 = vld [vmem:[#allocation6 + $0x2d0] ss:$36 sps:$4 sm:$0xff]   ;;  %v4149_v1 = vld [vmem:[#allocation6 + $0x288] ss:$36 sps:$4 sm:$0xff]  }
  0x6a   : > { %1644 = vmatpush1.bf16.msra.mxu1 %v4089_v20  ;;  %1604 = vmatprep.subr.bf16.mxu0 %v4090_v21  ;;  %v4140_v59 = vld [vmem:[#allocation6 + $0x98] ss:$36 sps:$4 sm:$0xff]   ;;  %v4144_v61 = vld [vmem:[#allocation6 + $0x28c] ss:$36 sps:$4 sm:$0xff]   ;;  %v4150_v2 = vld [vmem:[#allocation6 + $0x244] ss:$36 sps:$4 sm:$0xff]  }
  0x6b   : > { %1645 = vmatprep.subr.bf16.mxu1 %v4092_v22  ;;  %1626 = vmatprep.mubr.bf16.mxu0 %v4819_v53  ;;  %v4148_v62 = vld [vmem:[#allocation6 + $0x54] ss:$36 sps:$4 sm:$0xff]   ;;  %v4154_v3 = vld [vmem:[#allocation6 + $0xc] ss:$36 sps:$4 sm:$0xff]   ;;  %v4155_v5 = vld [vmem:[#allocation6 + $0x240] ss:$36 sps:$4 sm:$0xff]  }
  0x6c   : > { %v4146_v63 = vld [vmem:[#allocation6 + $0x50] ss:$36 sps:$4 sm:$0xff]   ;;  %v4152_v4 = vld [vmem:[#allocation6 + $0x8] ss:$36 sps:$4 sm:$0xff]   ;;  %v4156_v10 = vld [vmem:[#allocation6 + $0x440] ss:$36 sps:$4 sm:$0xff]  }
  0x6d   : > { %1605 = vmatpush1.bf16.msra.mxu0 %v4094_v23  ;;  %v244_v6 = vld [vmem:[%s4803_s12] sm:$0xff]  ;;  %v4159_v11 = vld [vmem:[#allocation6 + $0x680] ss:$36 sps:$4 sm:$0xff]   ;;  %v4162_v14 = vld [vmem:[#allocation6 + $0x3f8] ss:$36 sps:$4 sm:$0xff]   ;;  %vm2078_vm2 = vcmask 1043456  }
  0x6e   : > { %1646 = vmatpush1.bf16.msra.mxu1 %v4095_v24  ;;  %1606 = vmatprep.subr.bf16.mxu0 %v4096_v25  ;;  %v4158_v7 = vld [vmem:[#allocation6 + $0x444] ss:$36 sps:$4 sm:$0xff]   ;;  %v4824_v9 = vpack.c.bf16 %v244_v6, %v244_v6  ;;  %v4164_v12 = vld [vmem:[#allocation6 + $0x3fc] ss:$36 sps:$4 sm:$0xff]   ;;  %v4170_v16 = vld [vmem:[#allocation6 + $0x3b4] ss:$36 sps:$4 sm:$0xff]  }
  0x6f   : > { %1647 = vmatprep.subr.bf16.mxu1 %v4098_v26  ;;  %v4161_v8 = vld [vmem:[#allocation6 + $0x684] ss:$36 sps:$4 sm:$0xff]   ;;  %v4167_v13 = vld [vmem:[#allocation6 + $0x63c] ss:$36 sps:$4 sm:$0xff]   ;;  %v4173_v17 = vld [vmem:[#allocation6 + $0x5f4] ss:$36 sps:$4 sm:$0xff]  }
  0x70   : > { %v4165_v15 = vld [vmem:[#allocation6 + $0x638] ss:$36 sps:$4 sm:$0xff]   ;;  %v4168_v18 = vld [vmem:[#allocation6 + $0x3b0] ss:$36 sps:$4 sm:$0xff]   ;;  %v4174_v22 = vld [vmem:[#allocation6 + $0x368] ss:$36 sps:$4 sm:$0xff]  }
  0x71   : > { %1607 = vmatpush1.bf16.msra.mxu0 %v4100_v27  ;;  %v4171_v19 = vld [vmem:[#allocation6 + $0x5f0] ss:$36 sps:$4 sm:$0xff]   ;;  %v4177_v23 = vld [vmem:[#allocation6 + $0x5a8] ss:$36 sps:$4 sm:$0xff]   ;;  %v4180_v26 = vld [vmem:[#allocation6 + $0x320] ss:$36 sps:$4 sm:$0xff]  }
  0x72   : > { %1648 = vmatpush1.bf16.msra.mxu1 %v4101_v28  ;;  %1608 = vmatprep.subr.bf16.mxu0 %v4102_v29  ;;  %v4176_v20 = vld [vmem:[#allocation6 + $0x36c] ss:$36 sps:$4 sm:$0xff]   ;;  %v4182_v24 = vld [vmem:[#allocation6 + $0x324] ss:$36 sps:$4 sm:$0xff]   ;;  %v4188_v28 = vld [vmem:[#allocation6 + $0x2dc] ss:$36 sps:$4 sm:$0xff]  }
  0x73   : > { %1649 = vmatprep.subr.bf16.mxu1 %v4104_v30  ;;  %v4179_v21 = vld [vmem:[#allocation6 + $0x5ac] ss:$36 sps:$4 sm:$0xff]   ;;  %v4185_v25 = vld [vmem:[#allocation6 + $0x564] ss:$36 sps:$4 sm:$0xff]   ;;  %v4191_v29 = vld [vmem:[#allocation6 + $0x51c] ss:$36 sps:$4 sm:$0xff]  }
  0x74   : > { %v4183_v27 = vld [vmem:[#allocation6 + $0x560] ss:$36 sps:$4 sm:$0xff]   ;;  %v4186_v30 = vld [vmem:[#allocation6 + $0x2d8] ss:$36 sps:$4 sm:$0xff]   ;;  %vm2064_vm4 = vcmask 64512   ;;  %s242_s6 = scalar_lea.vmem [#allocation9], %s3978_s10 }
  0x75   : > { %1609 = vmatpush1.bf16.msra.mxu0 %v4106_v31  ;;  %v4189_v31 = vld [vmem:[#allocation6 + $0x518] ss:$36 sps:$4 sm:$0xff]   ;;  %s3979_s8 = smul.u32 384, %s4700_s19  ;;  %s3377_s9 = sshll.u32 %s242_s6, 4  ;;  %s3378_s9 = int_to_ptr.vmem [resolvable:$true] %s3377_s9 }
  0x76   : > { %1650 = vmatpush1.bf16.msra.mxu1 %v4107_v32  ;;  %1610 = vmatprep.subr.bf16.mxu0 %v4108_v34  ;;  %v4194_v32 = vld [vmem:[#allocation6 + $0x294] ss:$36 sps:$4 sm:$0xff]   ;;  %v4245_v50 = vld [vmem:[#allocation6 + $0x5fc] ss:$36 sps:$4 sm:$0xff]   ;;  %s3363_s27 = scalar_lea.sflag [#allocation5], %s4797_s7  ;;  %s4572_s26 = scalar_lea.vmem %s3378_s9, 384 }
  0x77   : > { %1676 = vmatprep.subr.bf16.mxu1 %v4112_v35  ;;  %v4197_v33 = vld [vmem:[#allocation6 + $0x4d4] ss:$36 sps:$4 sm:$0xff]   ;;  %s3375_s28 = scalar_lea.hbm %s5046_s4, %s3979_s8  ;;  %p4573_p11 = scmp.ne.s32.totalorder %s3378_s9, %s4572_s26 }
  0x78   : > { %v4192_v34 = vld [vmem:[#allocation6 + $0x290] ss:$36 sps:$4 sm:$0xff]   ;;  %p5064_p0 = scmp.ne.s32.totalorder %s5056_s25, 0  ;;  %s4653_s30 = smov [#allocation9]  }
  0x79   : > { %1668 = vmatmul.mubr.bf16.vlgmr.msra.gmra.mxu1 %v4815_v36  ;;  %1611 = vmatpush2.bf16.msra.mxu0 %v4113_v38  ;;  %v4195_v35 = vld [vmem:[#allocation6 + $0x4d0] ss:$36 sps:$4 sm:$0xff]   ;;  %s4576_s5 = sshll.u32 %s4653_s30, 4  ;;  %s4577_s5 = int_to_ptr.vmem [resolvable:$false] %s4576_s5 }
  0x7a   : > { %1677 = vmatpush1.bf16.msra.mxu1 %v4110_v37  ;;  %1612 = vmatprep.subr.bf16.mxu0 %v4114_v39  ;;  %v4200_v37 = vld [vmem:[#allocation6 + $0x24c] ss:$36 sps:$4 sm:$0xff]   ;;  %v4227_v6 = vld [vmem:[#allocation6 + $0x14] ss:$36 sps:$4 sm:$0xff]   ;;  %p4574_p1 = pnand %p4573_p11, %p5064_p0  ;;  %s4578_s19 = scalar_lea.vmem %s4577_s5, 768 }
  0x7b   : > { %1678 = vmatprep.subr.bf16.mxu1 %v4118_v40  ;;  %1708 = vmatprep.mubr.bf16.mxu1 %v4819_v53  ;;  %v4203_v38 = vld [vmem:[#allocation6 + $0x48c] ss:$36 sps:$4 sm:$0xff]   ;;  %p4579_p6 = scmp.lt.s32.totalorder %s3378_s9, %s4577_s5  ;;  %p4580_p12 = scmp.lt.s32.totalorder %s4578_s19, %s4572_s26 }
  0x7c   : > { %v4198_v39 = vld [vmem:[#allocation6 + $0x248] ss:$36 sps:$4 sm:$0xff]   ;;  %p4575_p2 = pneg %p4574_p1 }
  0x7d   : > { %1613 = vmatpush2.bf16.msra.mxu0 %v4119_v42  ;;  %v4201_v40 = vld [vmem:[#allocation6 + $0x488] ss:$36 sps:$4 sm:$0xff]   ;;  %p4581_p3 = por %p4580_p12, %p4579_p6 }
  0x7e   : > { %1679 = vmatpush1.bf16.msra.mxu1 %v4116_v41  ;;  %1614 = vmatprep.subr.bf16.mxu0 %v4120_v43  ;;  %v4206_v41 = vld [vmem:[#allocation6 + $0x20c] ss:$36 sps:$4 sm:$0xff]  }
  0x7f   : > { %1680 = vmatprep.subr.bf16.mxu1 %v4124_v44  ;;  %v4233_v42 = vld [vmem:[#allocation6 + $0x68c] ss:$36 sps:$4 sm:$0xff]   ;;  %v4209_v44 = vld [vmem:[#allocation6 + $0x1c4] ss:$36 sps:$4 sm:$0xff]   ;;  %p4582_p9 = pnand %p4581_p3, %p4575_p2 }
  0x80   : > { %v4204_v43 = vld [vmem:[#allocation6 + $0x208] ss:$36 sps:$4 sm:$0xff]  }
  0x81   : > { %1615 = vmatpush2.bf16.msra.mxu0 %v4125_v46  ;;  %v4239_v46 = vld [vmem:[#allocation6 + $0x644] ss:$36 sps:$4 sm:$0xff]  }
  0x82   : > { %1681 = vmatpush1.bf16.msra.mxu1 %v4122_v45  ;;  %1616 = vmatprep.subr.bf16.mxu0 %v4126_v47  ;;  %v4231_v45 = vld [vmem:[#allocation6 + $0x688] ss:$36 sps:$4 sm:$0xff]   ;;  %v4207_v47 = vld [vmem:[#allocation6 + $0x1c0] ss:$36 sps:$4 sm:$0xff]  }
  0x83   : > { %1682 = vmatprep.subr.bf16.mxu1 %v4130_v48  ;;  %v4212_v48 = vld [vmem:[#allocation6 + $0x17c] ss:$36 sps:$4 sm:$0xff]  }
  0x85   : > { %1617 = vmatpush2.bf16.msra.mxu0 %v4131_v51  ;;  %v4210_v51 = vld [vmem:[#allocation6 + $0x178] ss:$36 sps:$4 sm:$0xff]  }
  0x86   : > { %1683 = vmatpush1.bf16.msra.mxu1 %v4128_v49  ;;  %1618 = vmatprep.subr.bf16.mxu0 %v4132_v52  ;;  %v4237_v49 = vld [vmem:[#allocation6 + $0x640] ss:$36 sps:$4 sm:$0xff]   ;;  %v4215_v52 = vld [vmem:[#allocation6 + $0x134] ss:$36 sps:$4 sm:$0xff]  }
  0x87   : > { %1684 = vmatprep.subr.bf16.mxu1 %v4136_v54  ;;  %v4243_v54 = vld [vmem:[#allocation6 + $0x5f8] ss:$36 sps:$4 sm:$0xff]  }
  0x89   : > { %1619 = vmatpush2.bf16.msra.mxu0 %v4137_v56  ;;  %v4213_v56 = vld [vmem:[#allocation6 + $0x130] ss:$36 sps:$4 sm:$0xff]  }
  0x8a   : > { %1685 = vmatpush1.bf16.msra.mxu1 %v4134_v55  ;;  %1620 = vmatprep.subr.bf16.mxu0 %v4138_v57  ;;  %v4251_v55 = vld [vmem:[#allocation6 + $0x5b4] ss:$36 sps:$4 sm:$0xff]   ;;  %v4218_v57 = vld [vmem:[#allocation6 + $0xec] ss:$36 sps:$4 sm:$0xff]  }
  0x8b   : > { %1686 = vmatprep.subr.bf16.mxu1 %v4142_v58  ;;  %v4249_v58 = vld [vmem:[#allocation6 + $0x5b0] ss:$36 sps:$4 sm:$0xff]  }
  0x8d   : > { %1621 = vmatpush2.bf16.msra.mxu0 %v4143_v60  ;;  %v4216_v60 = vld [vmem:[#allocation6 + $0xe8] ss:$36 sps:$4 sm:$0xff]  }
  0x8e   : > { %1687 = vmatpush1.bf16.msra.mxu1 %v4140_v59  ;;  %1622 = vmatprep.subr.bf16.mxu0 %v4144_v61  ;;  %v4257_v59 = vld [vmem:[#allocation6 + $0x56c] ss:$36 sps:$4 sm:$0xff]   ;;  %v4221_v61 = vld [vmem:[#allocation6 + $0xa4] ss:$36 sps:$4 sm:$0xff]  }
  0x8f   : > { %1688 = vmatprep.subr.bf16.mxu1 %v4148_v62  ;;  %v4255_v62 = vld [vmem:[#allocation6 + $0x568] ss:$36 sps:$4 sm:$0xff]  }
  0x91   : > { %1623 = vmatpush2.bf16.msra.mxu0 %v4149_v1  ;;  %v4219_v1 = vld [vmem:[#allocation6 + $0xa0] ss:$36 sps:$4 sm:$0xff]  }
  0x92   : > { %1689 = vmatpush1.bf16.msra.mxu1 %v4146_v63  ;;  %1624 = vmatprep.subr.bf16.mxu0 %v4150_v2  ;;  %v4263_v63 = vld [vmem:[#allocation6 + $0x524] ss:$36 sps:$4 sm:$0xff]   ;;  %v4224_v2 = vld [vmem:[#allocation6 + $0x5c] ss:$36 sps:$4 sm:$0xff]  }
  0x93   : > { %1690 = vmatprep.subr.bf16.mxu1 %v4154_v3  ;;  %v4261_v3 = vld [vmem:[#allocation6 + $0x520] ss:$36 sps:$4 sm:$0xff]  }
  0x95   : > { %1625 = vmatpush2.bf16.msra.mxu0 %v4155_v5  ;;  %v4222_v5 = vld [vmem:[#allocation6 + $0x58] ss:$36 sps:$4 sm:$0xff]  }
  0x96   : > { %1691 = vmatpush1.bf16.msra.mxu1 %v4152_v4  ;;  %1717 = vmatprep.subr.bf16.mxu0 %v4161_v8  ;;  %v4269_v4 = vld [vmem:[#allocation6 + $0x4dc] ss:$36 sps:$4 sm:$0xff]   ;;  %v4275_v8 = vld [vmem:[#allocation6 + $0x494] ss:$36 sps:$4 sm:$0xff]  }
  0x97   : > { %1692 = vmatprep.subr.bf16.mxu1 %v4158_v7  ;;  %v4267_v7 = vld [vmem:[#allocation6 + $0x4d8] ss:$36 sps:$4 sm:$0xff]  }
  0x98   : > { %1627 = vmatmul.mubr.bf16.vlgmr.msra.gmra.mxu0 %v4824_v9 }
  0x99   : > { %1718 = vmatpush1.bf16.msra.mxu0 %v4159_v11  ;;  %1749 = vmatprep.mubr.bf16.mxu0 %v4649_v0  ;;  %v4230_v11 = vld [vmem:[#allocation6 + $0x44c] ss:$36 sps:$4 sm:$0xff]  }
  0x9a   : > { %1693 = vmatpush2.bf16.msra.mxu1 %v4156_v10  ;;  %1719 = vmatprep.subr.bf16.mxu0 %v4167_v13  ;;  %v4225_v10 = vld [vmem:[#allocation6 + $0x10] ss:$36 sps:$4 sm:$0xff]  }
  0x9b   : > { %1694 = vmatprep.subr.bf16.mxu1 %v4164_v12  ;;  %v4273_v12 = vld [vmem:[#allocation6 + $0x490] ss:$36 sps:$4 sm:$0xff]  }
  0x9c   : > { %v4278_v13 = vld [vmem:[#allocation6 + $0x214] ss:$36 sps:$4 sm:$0xff]  }
  0x9d   : > { %1720 = vmatpush1.bf16.msra.mxu0 %v4165_v15  ;;  %v4236_v15 = vld [vmem:[#allocation6 + $0x404] ss:$36 sps:$4 sm:$0xff]  }
  0x9e   : > { %1695 = vmatpush2.bf16.msra.mxu1 %v4162_v14  ;;  %1721 = vmatprep.subr.bf16.mxu0 %v4173_v17  ;;  %v4228_v14 = vld [vmem:[#allocation6 + $0x448] ss:$36 sps:$4 sm:$0xff]  }
  0x9f   : > { %1696 = vmatprep.subr.bf16.mxu1 %v4170_v16  ;;  %v4276_v16 = vld [vmem:[#allocation6 + $0x210] ss:$36 sps:$4 sm:$0xff]  }
  0xa0   : > { %v4281_v17 = vld [vmem:[#allocation6 + $0x1cc] ss:$36 sps:$4 sm:$0xff]  }
  0xa1   : > { %1722 = vmatpush1.bf16.msra.mxu0 %v4171_v19  ;;  %v4242_v19 = vld [vmem:[#allocation6 + $0x3bc] ss:$36 sps:$4 sm:$0xff]  }
  0xa2   : > { %1697 = vmatpush2.bf16.msra.mxu1 %v4168_v18  ;;  %1723 = vmatprep.subr.bf16.mxu0 %v4179_v21  ;;  %v4234_v18 = vld [vmem:[#allocation6 + $0x400] ss:$36 sps:$4 sm:$0xff]  }
  0xa3   : > { %1698 = vmatprep.subr.bf16.mxu1 %v4176_v20  ;;  %v4279_v20 = vld [vmem:[#allocation6 + $0x1c8] ss:$36 sps:$4 sm:$0xff]  }
  0xa4   : > { %v4284_v21 = vld [vmem:[#allocation6 + $0x184] ss:$36 sps:$4 sm:$0xff]  }
  0xa5   : > { %1724 = vmatpush1.bf16.msra.mxu0 %v4177_v23  ;;  %v4282_v23 = vld [vmem:[#allocation6 + $0x180] ss:$36 sps:$4 sm:$0xff]  }
  0xa6   : > { %1699 = vmatpush2.bf16.msra.mxu1 %v4174_v22  ;;  %1725 = vmatprep.subr.bf16.mxu0 %v4185_v25  ;;  %v4240_v22 = vld [vmem:[#allocation6 + $0x3b8] ss:$36 sps:$4 sm:$0xff]  }
  0xa7   : > { %1700 = vmatprep.subr.bf16.mxu1 %v4182_v24  ;;  %v4248_v24 = vld [vmem:[#allocation6 + $0x374] ss:$36 sps:$4 sm:$0xff]   ;;  %v4287_v25 = vld [vmem:[#allocation6 + $0x13c] ss:$36 sps:$4 sm:$0xff]  }
  0xa9   : > { %1726 = vmatpush1.bf16.msra.mxu0 %v4183_v27  ;;  %v4254_v27 = vld [vmem:[#allocation6 + $0x32c] ss:$36 sps:$4 sm:$0xff]  }
  0xaa   : > { %1701 = vmatpush2.bf16.msra.mxu1 %v4180_v26  ;;  %1727 = vmatprep.subr.bf16.mxu0 %v4191_v29  ;;  %v4246_v26 = vld [vmem:[#allocation6 + $0x370] ss:$36 sps:$4 sm:$0xff]  }
  0xab   : > { %1702 = vmatprep.subr.bf16.mxu1 %v4188_v28  ;;  %v4285_v28 = vld [vmem:[#allocation6 + $0x138] ss:$36 sps:$4 sm:$0xff]  }
  0xac   : > { %v4290_v29 = vld [vmem:[#allocation6 + $0xf4] ss:$36 sps:$4 sm:$0xff]  }
  0xad   : > { %1728 = vmatpush1.bf16.msra.mxu0 %v4189_v31  ;;  %v4260_v31 = vld [vmem:[#allocation6 + $0x2e4] ss:$36 sps:$4 sm:$0xff]  }
  0xae   : > { %1703 = vmatpush2.bf16.msra.mxu1 %v4186_v30  ;;  %1729 = vmatprep.subr.bf16.mxu0 %v4197_v33  ;;  %v4252_v30 = vld [vmem:[#allocation6 + $0x328] ss:$36 sps:$4 sm:$0xff]  }
  0xaf   : > { %1704 = vmatprep.subr.bf16.mxu1 %v4194_v32  ;;  %v4288_v32 = vld [vmem:[#allocation6 + $0xf0] ss:$36 sps:$4 sm:$0xff]  }
  0xb0   : > { %v4293_v33 = vld [vmem:[#allocation6 + $0xac] ss:$36 sps:$4 sm:$0xff]  }
  0xb1   : > { %1730 = vmatpush1.bf16.msra.mxu0 %v4195_v35  ;;  %v4266_v35 = vld [vmem:[#allocation6 + $0x29c] ss:$36 sps:$4 sm:$0xff]  }
  0xb2   : > { %1705 = vmatpush2.bf16.msra.mxu1 %v4192_v34  ;;  %1731 = vmatprep.subr.bf16.mxu0 %v4203_v38  ;;  %v4258_v34 = vld [vmem:[#allocation6 + $0x2e0] ss:$36 sps:$4 sm:$0xff]  }
  0xb3   : > { %1706 = vmatprep.subr.bf16.mxu1 %v4200_v37  ;;  %v4291_v37 = vld [vmem:[#allocation6 + $0xa8] ss:$36 sps:$4 sm:$0xff]  }
  0xb4   : > { %v4296_v38 = vld [vmem:[#allocation6 + $0x64] ss:$36 sps:$4 sm:$0xff]  }
  0xb5   : > { %1732 = vmatpush1.bf16.msra.mxu0 %v4201_v40  ;;  %v4294_v40 = vld [vmem:[#allocation6 + $0x60] ss:$36 sps:$4 sm:$0xff]  }
  0xb6   : > { %1707 = vmatpush2.bf16.msra.mxu1 %v4198_v39  ;;  %1758 = vmatprep.subr.bf16.mxu0 %v4206_v41  ;;  %v4264_v39 = vld [vmem:[#allocation6 + $0x298] ss:$36 sps:$4 sm:$0xff]  }
  0xb7   : > { %1799 = vmatprep.subr.bf16.mxu1 %v4233_v42  ;;  %v4272_v41 = vld [vmem:[#allocation6 + $0x254] ss:$36 sps:$4 sm:$0xff]   ;;  %v4299_v42 = vld [vmem:[#allocation6 + $0x1c] ss:$36 sps:$4 sm:$0xff]  }
  0xb8   : > { %1750 = vmatmul.mubr.bf16.vlgmr.msra.gmra.mxu0 %v4815_v36 }
  0xb9   : > { %1709 = vmatmul.mubr.bf16.vlgmr.msra.gmra.mxu1 %v4824_v9  ;;  %1759 = vmatpush1.bf16.msra.mxu0 %v4204_v43  ;;  %v4270_v43 = vld [vmem:[#allocation6 + $0x250] ss:$36 sps:$4 sm:$0xff]  }
  0xba   : > { %1800 = vmatpush1.bf16.msra.mxu1 %v4231_v45  ;;  %1760 = vmatprep.subr.bf16.mxu0 %v4209_v44  ;;  %v4297_v44 = vld [vmem:[#allocation6 + $0x18] ss:$36 sps:$4 sm:$0xff]  }
  0xbb   : > { %1801 = vmatprep.subr.bf16.mxu1 %v4239_v46  ;;  %1790 = vmatprep.mubr.bf16.mxu0 %v4819_v53  ;;  %v4302_v45 = vld [vmem:[#allocation6 + $0x454] ss:$36 sps:$4 sm:$0xff]  }
  0xbc   : > { %1831 = vmatprep.mubr.bf16.mxu1 %v4649_v0  ;;  %v4305_v46 = vld [vmem:[#allocation6 + $0x694] ss:$36 sps:$4 sm:$0xff]  }
  0xbd   : > { %1761 = vmatpush1.bf16.msra.mxu0 %v4207_v47  ;;  %v4300_v47 = vld [vmem:[#allocation6 + $0x450] ss:$36 sps:$4 sm:$0xff]  }
  0xbe   : > { %1802 = vmatpush1.bf16.msra.mxu1 %v4237_v49  ;;  %1762 = vmatprep.subr.bf16.mxu0 %v4212_v48  ;;  %v4303_v48 = vld [vmem:[#allocation6 + $0x690] ss:$36 sps:$4 sm:$0xff]  }
  0xbf   : > { %1803 = vmatprep.subr.bf16.mxu1 %v4245_v50  ;;  %v4308_v49 = vld [vmem:[#allocation6 + $0x40c] ss:$36 sps:$4 sm:$0xff]  }
  0xc0   : > { %v4311_v50 = vld [vmem:[#allocation6 + $0x64c] ss:$36 sps:$4 sm:$0xff]  }
  0xc1   : > { %1763 = vmatpush1.bf16.msra.mxu0 %v4210_v51  ;;  %v4306_v51 = vld [vmem:[#allocation6 + $0x408] ss:$36 sps:$4 sm:$0xff]  }
  0xc2   : > { %1804 = vmatpush1.bf16.msra.mxu1 %v4243_v54  ;;  %1764 = vmatprep.subr.bf16.mxu0 %v4215_v52  ;;  %v4309_v52 = vld [vmem:[#allocation6 + $0x648] ss:$36 sps:$4 sm:$0xff]  }
  0xc3   : > { %1805 = vmatprep.subr.bf16.mxu1 %v4251_v55  ;;  %v4314_v54 = vld [vmem:[#allocation6 + $0x3c4] ss:$36 sps:$4 sm:$0xff]  }
  0xc4   : > { %v4317_v55 = vld [vmem:[#allocation6 + $0x604] ss:$36 sps:$4 sm:$0xff]  }
  0xc5   : > { %1765 = vmatpush1.bf16.msra.mxu0 %v4213_v56  ;;  %v4312_v56 = vld [vmem:[#allocation6 + $0x3c0] ss:$36 sps:$4 sm:$0xff]  }
  0xc6   : > { %1806 = vmatpush1.bf16.msra.mxu1 %v4249_v58  ;;  %1766 = vmatprep.subr.bf16.mxu0 %v4218_v57  ;;  %v4315_v57 = vld [vmem:[#allocation6 + $0x600] ss:$36 sps:$4 sm:$0xff]  }
  0xc7   : > { %1807 = vmatprep.subr.bf16.mxu1 %v4257_v59  ;;  %v4320_v58 = vld [vmem:[#allocation6 + $0x37c] ss:$36 sps:$4 sm:$0xff]  }
  0xc8   : > { %v4323_v59 = vld [vmem:[#allocation6 + $0x5bc] ss:$36 sps:$4 sm:$0xff]  }
  0xc9   : > { %1767 = vmatpush1.bf16.msra.mxu0 %v4216_v60  ;;  %v4318_v60 = vld [vmem:[#allocation6 + $0x378] ss:$36 sps:$4 sm:$0xff]  }
  0xca   : > { %1808 = vmatpush1.bf16.msra.mxu1 %v4255_v62  ;;  %1768 = vmatprep.subr.bf16.mxu0 %v4221_v61  ;;  %v4321_v61 = vld [vmem:[#allocation6 + $0x5b8] ss:$36 sps:$4 sm:$0xff]  }
  0xcb   : > { %1809 = vmatprep.subr.bf16.mxu1 %v4263_v63  ;;  %v4326_v62 = vld [vmem:[#allocation6 + $0x334] ss:$36 sps:$4 sm:$0xff]  }
  0xcc   : > { %v4329_v63 = vld [vmem:[#allocation6 + $0x574] ss:$36 sps:$4 sm:$0xff]  }
  0xcd   : > { %1769 = vmatpush1.bf16.msra.mxu0 %v4219_v1  ;;  %v4324_v1 = vld [vmem:[#allocation6 + $0x330] ss:$36 sps:$4 sm:$0xff]  }
  0xce   : > { %1810 = vmatpush1.bf16.msra.mxu1 %v4261_v3  ;;  %1770 = vmatprep.subr.bf16.mxu0 %v4224_v2  ;;  %v4327_v2 = vld [vmem:[#allocation6 + $0x570] ss:$36 sps:$4 sm:$0xff]  }
  0xcf   : > { %1811 = vmatprep.subr.bf16.mxu1 %v4269_v4  ;;  %v4332_v3 = vld [vmem:[#allocation6 + $0x2ec] ss:$36 sps:$4 sm:$0xff]  }
  0xd0   : > { %v4335_v4 = vld [vmem:[#allocation6 + $0x52c] ss:$36 sps:$4 sm:$0xff]  }
  0xd1   : > { %1771 = vmatpush1.bf16.msra.mxu0 %v4222_v5  ;;  %v4330_v5 = vld [vmem:[#allocation6 + $0x2e8] ss:$36 sps:$4 sm:$0xff]  }
  0xd2   : > { %1812 = vmatpush1.bf16.msra.mxu1 %v4267_v7  ;;  %1772 = vmatprep.subr.bf16.mxu0 %v4227_v6  ;;  %v4333_v6 = vld [vmem:[#allocation6 + $0x528] ss:$36 sps:$4 sm:$0xff]  }
  0xd3   : > { %1813 = vmatprep.subr.bf16.mxu1 %v4275_v8  ;;  %v4338_v7 = vld [vmem:[#allocation6 + $0x2a4] ss:$36 sps:$4 sm:$0xff]  }
  0xd4   : > { %v4341_v8 = vld [vmem:[#allocation6 + $0x4e4] ss:$36 sps:$4 sm:$0xff]  }
  0xd5   : > { %1773 = vmatpush1.bf16.msra.mxu0 %v4225_v10  ;;  %v4336_v10 = vld [vmem:[#allocation6 + $0x2a0] ss:$36 sps:$4 sm:$0xff]  }
  0xd6   : > { %1814 = vmatpush1.bf16.msra.mxu1 %v4273_v12  ;;  %1774 = vmatprep.subr.bf16.mxu0 %v4230_v11  ;;  %v4339_v11 = vld [vmem:[#allocation6 + $0x4e0] ss:$36 sps:$4 sm:$0xff]  }
  0xd7   : > { %1840 = vmatprep.subr.bf16.mxu1 %v4278_v13  ;;  %v4344_v12 = vld [vmem:[#allocation6 + $0x25c] ss:$36 sps:$4 sm:$0xff]  }
  0xd8   : > { %v4347_v13 = vld [vmem:[#allocation6 + $0x49c] ss:$36 sps:$4 sm:$0xff]  }
  0xd9   : > { %1832 = vmatmul.mubr.bf16.vlgmr.msra.gmra.mxu1 %v4815_v36  ;;  %1775 = vmatpush2.bf16.msra.mxu0 %v4228_v14  ;;  %v4342_v14 = vld [vmem:[#allocation6 + $0x258] ss:$36 sps:$4 sm:$0xff]  }
  0xda   : > { %1841 = vmatpush1.bf16.msra.mxu1 %v4276_v16  ;;  %1776 = vmatprep.subr.bf16.mxu0 %v4236_v15  ;;  %v4345_v15 = vld [vmem:[#allocation6 + $0x498] ss:$36 sps:$4 sm:$0xff]  }
  0xdb   : > { %1842 = vmatprep.subr.bf16.mxu1 %v4281_v17  ;;  %1872 = vmatprep.mubr.bf16.mxu1 %v4819_v53  ;;  %v4349_v16 = vld [vmem:[#allocation6 + $0x458] ss:$36 sps:$4 sm:$0xff]  }
  0xdc   : > { %v4348_v17 = vld [vmem:[#allocation6 + $0x698] ss:$36 sps:$4 sm:$0xff]  }
  0xdd   : > { %1777 = vmatpush2.bf16.msra.mxu0 %v4234_v18  ;;  %v4350_v18 = vld [vmem:[#allocation6 + $0x218] ss:$36 sps:$4 sm:$0xff]  }
  0xde   : > { %1843 = vmatpush1.bf16.msra.mxu1 %v4279_v20  ;;  %1778 = vmatprep.subr.bf16.mxu0 %v4242_v19  ;;  %v4650_v19 = vmov 0.0   ;;  %v4352_v20 = vld [vmem:[#allocation6 + $0x410] ss:$36 sps:$4 sm:$0xff]  }
  0xdf   : > { %1844 = vmatprep.subr.bf16.mxu1 %v4284_v21  ;;  %v4351_v21 = vld [vmem:[#allocation6 + $0x650] ss:$36 sps:$4 sm:$0xff]  }
  0xe1   : > { %1779 = vmatpush2.bf16.msra.mxu0 %v4240_v22  ;;  %v4353_v22 = vld [vmem:[#allocation6 + $0x1d0] ss:$36 sps:$4 sm:$0xff]  }
  0xe2   : > { %1845 = vmatpush1.bf16.msra.mxu1 %v4282_v23  ;;  %1780 = vmatprep.subr.bf16.mxu0 %v4248_v24  ;;  %v4355_v23 = vld [vmem:[#allocation6 + $0x3c8] ss:$36 sps:$4 sm:$0xff]  }
  0xe3   : > { %1846 = vmatprep.subr.bf16.mxu1 %v4287_v25  ;;  %v4354_v24 = vld [vmem:[#allocation6 + $0x608] ss:$36 sps:$4 sm:$0xff]  }
  0xe4   : > { %v4356_v25 = vld [vmem:[#allocation6 + $0x188] ss:$36 sps:$4 sm:$0xff]  }
  0xe5   : > { %1781 = vmatpush2.bf16.msra.mxu0 %v4246_v26  ;;  %v4358_v26 = vld [vmem:[#allocation6 + $0x380] ss:$36 sps:$4 sm:$0xff]  }
  0xe6   : > { %1847 = vmatpush1.bf16.msra.mxu1 %v4285_v28  ;;  %1782 = vmatprep.subr.bf16.mxu0 %v4254_v27  ;;  %v4357_v27 = vld [vmem:[#allocation6 + $0x5c0] ss:$36 sps:$4 sm:$0xff]  }
  0xe7   : > { %1848 = vmatprep.subr.bf16.mxu1 %v4290_v29  ;;  %v4359_v28 = vld [vmem:[#allocation6 + $0x140] ss:$36 sps:$4 sm:$0xff]   ;;  %v4361_v29 = vld [vmem:[#allocation6 + $0x338] ss:$36 sps:$4 sm:$0xff]  }
  0xe9   : > { %1783 = vmatpush2.bf16.msra.mxu0 %v4252_v30  ;;  %v4360_v30 = vld [vmem:[#allocation6 + $0x578] ss:$36 sps:$4 sm:$0xff]  }
  0xea   : > { %1849 = vmatpush1.bf16.msra.mxu1 %v4288_v32  ;;  %1784 = vmatprep.subr.bf16.mxu0 %v4260_v31  ;;  %v4364_v31 = vld [vmem:[#allocation6 + $0x2f0] ss:$36 sps:$4 sm:$0xff]  }
  0xeb   : > { %1850 = vmatprep.subr.bf16.mxu1 %v4293_v33  ;;  %v4363_v32 = vld [vmem:[#allocation6 + $0x530] ss:$36 sps:$4 sm:$0xff]  }
  0xec   : > { %v4365_v33 = vld [vmem:[#allocation6 + $0xb0] ss:$36 sps:$4 sm:$0xff]  }
  0xed   : > { %1785 = vmatpush2.bf16.msra.mxu0 %v4258_v34  ;;  %v4367_v34 = vld [vmem:[#allocation6 + $0x2a8] ss:$36 sps:$4 sm:$0xff]  }
  0xee   : > { %1851 = vmatpush1.bf16.msra.mxu1 %v4291_v37  ;;  %1786 = vmatprep.subr.bf16.mxu0 %v4266_v35  ;;  %v4366_v35 = vld [vmem:[#allocation6 + $0x4e8] ss:$36 sps:$4 sm:$0xff]  }
  0xef   : > { %1852 = vmatprep.subr.bf16.mxu1 %v4296_v38  ;;  %v4368_v37 = vld [vmem:[#allocation6 + $0x68] ss:$36 sps:$4 sm:$0xff]   ;;  %v4370_v38 = vld [vmem:[#allocation6 + $0x260] ss:$36 sps:$4 sm:$0xff]  }
  0xf1   : > { %1787 = vmatpush2.bf16.msra.mxu0 %v4264_v39  ;;  %v4369_v39 = vld [vmem:[#allocation6 + $0x4a0] ss:$36 sps:$4 sm:$0xff]  }
  0xf2   : > { %1853 = vmatpush1.bf16.msra.mxu1 %v4294_v40  ;;  %1788 = vmatprep.subr.bf16.mxu0 %v4272_v41  ;;  %v4371_v40 = vld [vmem:[#allocation6 + $0x20] ss:$36 sps:$4 sm:$0xff]  }
  0xf3   : > { %1854 = vmatprep.subr.bf16.mxu1 %v4299_v42 }
  0xf5   : > { %1789 = vmatpush2.bf16.msra.mxu0 %v4270_v43 }
  0xf6   : > { %1855 = vmatpush1.bf16.msra.mxu1 %v4297_v44  ;;  %1881 = vmatprep.subr.bf16.mxu0 %v4305_v46 }
  0xf7   : > { %1856 = vmatprep.subr.bf16.mxu1 %v4302_v45 }
  0xf8   : > { %1791 = vmatmul.mubr.bf16.vlgmr.msra.gmra.mxu0 %v4824_v9 }
  0xf9   : > { %1882 = vmatpush1.bf16.msra.mxu0 %v4303_v48  ;;  %1913 = vmatprep.mubr.bf16.mxu0 %v4649_v0 }
  0xfa   : > { %1857 = vmatpush2.bf16.msra.mxu1 %v4300_v47  ;;  %1883 = vmatprep.subr.bf16.mxu0 %v4311_v50 }
  0xfb   : > { %1858 = vmatprep.subr.bf16.mxu1 %v4308_v49 }
  0xfd   : > { %1884 = vmatpush1.bf16.msra.mxu0 %v4309_v52 }
  0xfe   : > { %1859 = vmatpush2.bf16.msra.mxu1 %v4306_v51  ;;  %1885 = vmatprep.subr.bf16.mxu0 %v4317_v55 }
  0xff   : > { %1860 = vmatprep.subr.bf16.mxu1 %v4314_v54 }
 0x101   : > { %1886 = vmatpush1.bf16.msra.mxu0 %v4315_v57 }
 0x102   : > { %1861 = vmatpush2.bf16.msra.mxu1 %v4312_v56  ;;  %1887 = vmatprep.subr.bf16.mxu0 %v4323_v59 }
 0x103   : > { %1862 = vmatprep.subr.bf16.mxu1 %v4320_v58 }
 0x105   : > { %1888 = vmatpush1.bf16.msra.mxu0 %v4321_v61 }
 0x106   : > { %1863 = vmatpush2.bf16.msra.mxu1 %v4318_v60  ;;  %1889 = vmatprep.subr.bf16.mxu0 %v4329_v63 }
 0x107   : > { %1864 = vmatprep.subr.bf16.mxu1 %v4326_v62 }
 0x109   : > { %1890 = vmatpush1.bf16.msra.mxu0 %v4327_v2 }
 0x10a   : > { %1865 = vmatpush2.bf16.msra.mxu1 %v4324_v1  ;;  %1891 = vmatprep.subr.bf16.mxu0 %v4335_v4 }
 0x10b   : > { %1866 = vmatprep.subr.bf16.mxu1 %v4332_v3 }
 0x10d   : > { %1892 = vmatpush1.bf16.msra.mxu0 %v4333_v6 }
 0x10e   : > { %1867 = vmatpush2.bf16.msra.mxu1 %v4330_v5  ;;  %1893 = vmatprep.subr.bf16.mxu0 %v4341_v8 }
 0x10f   : > { %1868 = vmatprep.subr.bf16.mxu1 %v4338_v7 }
 0x111   : > { %1894 = vmatpush1.bf16.msra.mxu0 %v4339_v11 }
 0x112   : > { %1869 = vmatpush2.bf16.msra.mxu1 %v4336_v10  ;;  %1895 = vmatprep.subr.bf16.mxu0 %v4347_v13 }
 0x113   : > { %1870 = vmatprep.subr.bf16.mxu1 %v4344_v12 }
 0x115   : > { %1896 = vmatpush1.bf16.msra.mxu0 %v4345_v15 }
 0x116   : > { %1871 = vmatpush2.bf16.msra.mxu1 %v4342_v14  ;;  %3778 = vmatprep.subr.bf16.mxu0 %v4349_v16 }
 0x117   : > { %3864 = vmatprep.subr.bf16.mxu1 %v4650_v19 }
 0x118   : > { %1914 = vmatmul.mubr.bf16.vlgmr.msra.gmra.mxu0 %v4815_v36 }
 0x119   : > { %1873 = vmatmul.mubr.bf16.vlgmr.msra.gmra.mxu1 %v4824_v9  ;;  %3779 = vmatpush3.bf16.msra.mxu0 %v4350_v18 }
 0x11a   : > { %3865 = vmatpush3.bf16.msra.mxu1 %v4348_v17  ;;  %3780 = vmatprep.subr.bf16.mxu0 %v4352_v20 }
 0x11b   : > { %3866 = vmatprep.subr.bf16.mxu1 %v4650_v19  ;;  %3880 = vmatprep.mubr.msk.bf16.mxu1 %vm4651_vm0, %v4650_v19 }
 0x11c   : > { %1954 = vmatprep.mubr.bf16.mxu0 %v4819_v53  ;;  %v4362_v53 = vld [vmem:[#allocation6 + $0xf8] ss:$36 sps:$4 sm:$0xff]  }
 0x11d   : > { %3781 = vmatpush3.bf16.msra.mxu0 %v4353_v22 }
 0x11e   : > { %3867 = vmatpush3.bf16.msra.mxu1 %v4351_v21  ;;  %3782 = vmatprep.subr.bf16.mxu0 %v4355_v23 }
 0x11f   : > { %3868 = vmatprep.subr.bf16.mxu1 %v4650_v19 }
 0x121   : > { %3783 = vmatpush3.bf16.msra.mxu0 %v4356_v25 }
 0x122   : > { %3869 = vmatpush3.bf16.msra.mxu1 %v4354_v24  ;;  %3784 = vmatprep.subr.bf16.mxu0 %v4358_v26 }
 0x123   : > { %3870 = vmatprep.subr.bf16.mxu1 %v4650_v19 }
 0x125   : > { %3785 = vmatpush3.bf16.msra.mxu0 %v4359_v28 }
 0x126   : > { %3871 = vmatpush3.bf16.msra.mxu1 %v4357_v27  ;;  %3786 = vmatprep.subr.bf16.mxu0 %v4361_v29 }
 0x127   : > { %3872 = vmatprep.subr.bf16.mxu1 %v4650_v19 }
 0x129   : > { %3787 = vmatpush3.bf16.msra.mxu0 %v4362_v53 }
 0x12a   : > { %3873 = vmatpush3.bf16.msra.mxu1 %v4360_v30  ;;  %3788 = vmatprep.subr.bf16.mxu0 %v4364_v31 }
 0x12b   : > { %3874 = vmatprep.subr.bf16.mxu1 %v4650_v19 }
 0x12d   : > { %3789 = vmatpush3.bf16.msra.mxu0 %v4365_v33 }
 0x12e   : > { %3875 = vmatpush3.bf16.msra.mxu1 %v4363_v32  ;;  %3790 = vmatprep.subr.bf16.mxu0 %v4367_v34 }
 0x12f   : > { %3876 = vmatprep.subr.bf16.mxu1 %v4650_v19 }
 0x131   : > { %3791 = vmatpush3.bf16.msra.mxu0 %v4368_v37 }
 0x132   : > { %3877 = vmatpush3.bf16.msra.mxu1 %v4366_v35  ;;  %3792 = vmatprep.subr.bf16.mxu0 %v4370_v38 }
 0x133   : > { %3878 = vmatprep.subr.bf16.mxu1 %v4650_v19 }
 0x135   : > { %3793 = vmatpush3.bf16.msra.mxu0 %v4371_v40 }
 0x136   : > { %3879 = vmatpush3.bf16.msra.mxu1 %v4369_v39  ;;  %3908 = vmatprep.subr.bf16.mxu0 %v4650_v19 }
 0x137   : > { %3884 = vmatprep.subr.bf16.mxu1 %v4650_v19 }
 0x138   : > { %1955 = vmatmul.mubr.bf16.vlgmr.msra.gmra.mxu0 %v4824_v9 }
 0x139   : > { %v1669_v41 = vpop.f32.mrf.mxu1  ;;  %3881 = vmatmul.mubr.bf16.vlgmr.msra.gmra.mxu1 %v4815_v36  ;;  %3910 = vmatprep.mubr.msk.bf16.mxu0 %vm4651_vm0, %v4650_v19 }
 0x13a   : > { %3886 = vmatprep.mubr.msk.bf16.mxu1 %vm4651_vm0, %v4650_v19 }
 0x13b   : > { %v1671_v42 = vpop.f32.mrf.mxu1 }
 0x13d   : > { %v1673_v43 = vpop.f32.mrf.mxu1 }
 0x13f   : > { %v1674_v44 = vpop.f32.mrf.mxu1 }
 0x158   : > { %v1628_v45 = vpop.f32.mrf.mxu0 }
 0x159   : > { %v1670_v46 = vadd.f32 %v1669_v41, %v1628_v45  ;;  %v2058_v45 = vlaneseq }
 0x15a   : > { %v1630_v47 = vpop.f32.mrf.mxu0 }
 0x15b   : > { %v2002_v48 = vpack.c.bf16 %v1670_v46, %v1670_v46  ;;  %v1672_v49 = vadd.f32 %v1671_v42, %v1630_v47  ;;  %v4893_v47 = vshrl.u32 %v2058_v45, 7 }
 0x15c   : > { %v1632_v50 = vpop.f32.mrf.mxu0 }
 0x15d   : > { %2125 = vrot.lane.b32.xlu1 %v2002_v48, %s4652_s21  ;;  %v2003_v13 = vpack.c.bf16 %v1672_v49, %v1672_v49 }
 0x15e   : > { %v1633_v36 = vpop.f32.mrf.mxu0 }
 0x178   : > { %v1751_v51 = vpop.f32.mrf.mxu0 }
 0x179   : > { %v1710_v9 = vpop.f32.mrf.mxu1 }
 0x17a   : > { %v1752_v52 = vadd.f32 %v1751_v51, %v1710_v9  ;;  %v1753_v55 = vpop.f32.mrf.mxu0 }
 0x17b   : > { %v1712_v54 = vpop.f32.mrf.mxu1 }
 0x17c   : > { %v1754_v56 = vadd.f32 %v1753_v55, %v1712_v54  ;;  %v1755_v58 = vpop.f32.mrf.mxu0  ;;  %v2004_v15 = vpack.c.bf16 %v1752_v52, %v1752_v52 }
 0x17d   : > { %v1714_v57 = vpop.f32.mrf.mxu1 }
 0x17e   : > { %v4858_v59 = vpack.c.bf16 %v1754_v56, %v1754_v56  ;;  %v1756_v61 = vpop.f32.mrf.mxu0 }
 0x17f   : > { %v1715_v60 = vpop.f32.mrf.mxu1 }
 0x180   : > { %v2016_v62 = vsel %vm2011_vm1, %v4858_v59, 0 }
 0x181   : > { %3885 = vmatpush3.bf16.xpose.msra.mxu1 %v2016_v62 }
 0x182   : > { %3890 = vmatprep.subr.bf16.mxu1 %v4650_v19 }
 0x188   : > { %3887 = vmatmul.mubr.msk.bf16.vlgmr.msra.gmra.mxu1 %vm2011_vm1, %v2002_v48  ;;  %v2061_v48 = vand.u32 127, %v2058_v45 }
 0x189   : > { %3892 = vmatprep.mubr.msk.bf16.mxu1 %vm4651_vm0, %v4650_v19 }
 0x18a   : > { %vm4898_vm3 = vcmp.le.s32.totalorder %v2061_v48, %v4893_v47 }
 0x199   : > { %v1833_v63 = vpop.f32.mrf.mxu1 }
 0x19b   : > { %v1835_v1 = vpop.f32.mrf.mxu1 }
 0x19d   : > { %v1837_v2 = vpop.f32.mrf.mxu1 }
 0x19f   : > { %v1838_v3 = vpop.f32.mrf.mxu1 }
 0x1b8   : > { %v1792_v4 = vpop.f32.mrf.mxu0 }
 0x1b9   : > { %v1834_v5 = vadd.f32 %v1833_v63, %v1792_v4 }
 0x1ba   : > { %v1794_v6 = vpop.f32.mrf.mxu0 }
 0x1bb   : > { %v2006_v7 = vpack.c.bf16 %v1834_v5, %v1834_v5  ;;  %v1836_v11 = vadd.f32 %v1835_v1, %v1794_v6 }
 0x1bc   : > { %v1796_v8 = vpop.f32.mrf.mxu0 }
 0x1bd   : > { %v2248_v10 = vsel %vm2011_vm1, %v2006_v7, 0  ;;  %2353 = vrot.lane.b32.xlu1 %v2006_v7, %s4652_s21  ;;  %v2007_v14 = vpack.c.bf16 %v1836_v11, %v1836_v11 }
 0x1be   : > { %3909 = vmatpush3.bf16.xpose.msra.mxu0 %v2248_v10  ;;  %v1797_v12 = vpop.f32.mrf.mxu0 }
 0x1bf   : > { %3920 = vmatprep.subr.bf16.mxu0 %v4650_v19  ;;  %v2473_v43 = vsel %vm2011_vm1, %v2007_v14, 0 }
 0x1c1   : > { %2350 = vrot.lane.b32.xlu1 %v2003_v13, %s4652_s21 }
 0x1c5   : > { %3911 = vmatmul.mubr.msk.bf16.vlgmr.msra.gmra.mxu0 %vm2011_vm1, %v2003_v13  ;;  %2578 = vrot.lane.b32.xlu1 %v2007_v14, %s4652_s21 }
 0x1c6   : > { %3922 = vmatprep.mubr.msk.bf16.mxu0 %vm4651_vm0, %v4650_v19 }
 0x1c9   : > { %2575 = vrot.lane.b32.xlu1 %v2004_v15, %s4652_s21 }
 0x1cf   : > { %v2126_v39 = vpop.permute.xlu1 %2125 }
 0x1d8   : > { %v1915_v17 = vpop.f32.mrf.mxu0 }
 0x1d9   : > { %v1874_v16 = vpop.f32.mrf.mxu1 }
 0x1da   : > { %v1916_v18 = vadd.f32 %v1915_v17, %v1874_v16  ;;  %v1917_v21 = vpop.f32.mrf.mxu0 }
 0x1db   : > { %v1876_v20 = vpop.f32.mrf.mxu1 }
 0x1dc   : > { %v4875_v22 = vpack.c.bf16 %v1916_v18, %v1916_v18  ;;  %v4877_v23 = vadd.f32 %v1917_v21, %v1876_v20  ;;  %v1919_v25 = vpop.f32.mrf.mxu0 }
 0x1dd   : > { %v1878_v24 = vpop.f32.mrf.mxu1 }
 0x1de   : > { %v2080_v26 = vsel %vm2078_vm2, %v4875_v22, 0  ;;  %v1920_v28 = vpop.f32.mrf.mxu0 }
 0x1df   : > { %v1879_v27 = vpop.f32.mrf.mxu1  ;;  %3891 = vmatpush3.bf16.msra.mxu1 %v2080_v26  ;;  %v2009_v28 = vpack.c.bf16 %v4877_v23, %v4877_v23 }
 0x1e0   : > { %3896 = vmatprep.subr.bf16.mxu1 %v4650_v19 }
 0x1f8   : > { %v3794_v30 = vpop.f32.mrf.mxu0 }
 0x1f9   : > { %v1996_v29 = vpop.f32.mrf.mxu1 }
 0x1fa   : > { %v3795_v31 = vpop.f32.mrf.mxu0 }
 0x1fb   : > { %v3882_v53 = vpop.f32.mrf.mxu1  ;;  %v3796_v32 = vadd.f32 %v3795_v31, %v3794_v30 }
 0x1fc   : > { %v3797_v34 = vpop.f32.mrf.mxu0 }
 0x1fd   : > { %v1999_v33 = vpop.f32.mrf.mxu1  ;;  %v4882_v35 = vadd.f32 %v3796_v32, %v1996_v29 }
 0x1fe   : > { %v3798_v38 = vpop.f32.mrf.mxu0 }
 0x1ff   : > { %v3883_v37 = vpop.f32.mrf.mxu1 }
 0x22f   : > { %v2354_v40 = vpop.permute.xlu1 %2353 }
 0x230   : > { %v2359_v41 = vsel %vm2011_vm1, %v2354_v40, 0 }
 0x231   : > { %3921 = vmatpush3.bf16.xpose.msra.mxu0 %v2359_v41 }
 0x232   : > { %3932 = vmatprep.subr.bf16.mxu0 %v4650_v19 }
 0x233   : > { %v2351_v42 = vpop.permute.xlu1 %2350 }
 0x237   : > { %v2579_v44 = vpop.permute.xlu1 %2578 }
 0x238   : > { %3923 = vmatmul.mubr.msk.bf16.vlgmr.msra.gmra.mxu0 %vm2011_vm1, %v2351_v42  ;;  %v2584_v46 = vsel %vm2011_vm1, %v2579_v44, 0 }
 0x239   : > { %3933 = vmatpush3.bf16.xpose.msra.mxu0 %v2473_v43  ;;  %3934 = vmatprep.mubr.msk.bf16.mxu0 %vm4651_vm0, %v4650_v19 }
 0x23a   : > { %3944 = vmatprep.subr.bf16.mxu0 %v4650_v19 }
 0x23b   : > { %v2576_v50 = vpop.permute.xlu1 %2575 }
 0x240   : > { %3935 = vmatmul.mubr.msk.bf16.vlgmr.msra.gmra.mxu0 %vm2011_vm1, %v2004_v15 }
 0x241   : > { %3945 = vmatpush3.bf16.xpose.msra.mxu0 %v2584_v46  ;;  %3946 = vmatprep.mubr.msk.bf16.mxu0 %vm4651_vm0, %v4650_v19 }
 0x248   : > { %v2052_v36 = vpop.f32.mrf.mxu1  ;;  %3947 = vmatmul.mubr.msk.bf16.vlgmr.msra.gmra.mxu0 %vm2011_vm1, %v2576_v50 }
 0x249   : > { %v2063_v9 = vsel %vm4898_vm3, %v2052_v36, -1e+30 }
 0x24a   : > { %v3888_v51 = vpop.f32.mrf.mxu1  ;;  %v2065_v52 = vsel %vm2064_vm4, %v2063_v9, -inf }
 0x24b   : > { %2066 = vmax.xlane.f32.xlu0 %v2065_v52  ;;  %v2010_v51 = vpack.c.bf16 %v4882_v35, %v4882_v35 }
 0x24c   : > { %v2055_v54 = vpop.f32.mrf.mxu1 }
 0x24e   : > { %v3889_v55 = vpop.f32.mrf.mxu1 }
 0x261   : > { %2128 = vrot.lane.b32.xlu0 %v4858_v59, %s4652_s21 }
 0x285   : > { %v2284_v56 = vpop.f32.mrf.mxu0 }
 0x286   : > { %v4910_v57 = vsel %vm4898_vm3, %v2284_v56, -1e+30 }
 0x287   : > { %v3912_v58 = vpop.f32.mrf.mxu0  ;;  %v2291_v60 = vsel %vm2064_vm4, %v4910_v57, -inf }
 0x288   : > { %2292 = vmax.xlane.f32.xlu0 %v2291_v60 }
 0x289   : > { %v2287_v61 = vpop.f32.mrf.mxu0 }
 0x28b   : > { %v3913_v62 = vpop.f32.mrf.mxu0 }
 0x2d4   : > { %v2067_v63 = vpop.xlane.xlu0 %2066 }
 0x2d5   : > { %v2068_v1 = vsub.f32 %v2063_v9, %v2067_v63 }
 0x2d7   : > { %v2069_v2 = vmul.f32 1.442695, %v2068_v1 }
 0x2d8   : > { %v2129_v4 = vpop.permute.xlu0 %2128 }
 0x2d9   : > { %4468 = vpow2.f32 %v2069_v2  ;;  %v2134_v59 = vsel %vm2011_vm1, %v2129_v4, 0 }
 0x2e6   : > { %v4469_v3 = vpop.eup %4468 }
 0x2e7   : > { %v2074_v5 = vpack.c.bf16 %v4469_v3, %v4469_v3  ;;  %v2071_v40 = vsel %vm2064_vm4, %v4469_v3, 0.0 }
 0x2e9   : > { %3893 = vmatmul.mubr.msk.bf16.vlgmr.msra.gmra.mxu1 %vm2064_vm4, %v2074_v5 }
 0x2ea   : > { %3897 = vmatpush3.bf16.xpose.msra.mxu1 %v2134_v59  ;;  %3898 = vmatprep.mubr.msk.bf16.mxu1 %vm4651_vm0, %v4650_v19 }
 0x2eb   : > { %3902 = vmatprep.subr.bf16.mxu1 %v4650_v19 }
 0x2f1   : > { %3899 = vmatmul.mubr.msk.bf16.vlgmr.msra.gmra.mxu1 %vm2011_vm1, %v2126_v39 }
 0x2f2   : > { %3904 = vmatprep.mubr.msk.bf16.mxu1 %vm4651_vm0, %v4650_v19 }
 0x2f8   : > { %v2395_v6 = vpop.f32.mrf.mxu0 }
 0x2f9   : > { %v2401_v7 = vsel %vm4898_vm3, %v2395_v6, -1e+30 }
 0x2fa   : > { %v3924_v8 = vpop.f32.mrf.mxu0  ;;  %v2402_v10 = vsel %vm2064_vm4, %v2401_v7, -inf }
 0x2fb   : > { %2403 = vmax.xlane.f32.xlu1 %v2402_v10  ;;  %v2530_v10 = vsel %vm2078_vm2, %v2010_v51, 0 }
 0x2fc   : > { %v2398_v11 = vpop.f32.mrf.mxu0 }
 0x2fe   : > { %v3925_v12 = vpop.f32.mrf.mxu0 }
 0x300   : > { %v2509_v13 = vpop.f32.mrf.mxu0 }
 0x301   : > { %v2515_v14 = vsel %vm4898_vm3, %v2509_v13, -1e+30 }
 0x302   : > { %v3936_v15 = vpop.f32.mrf.mxu0  ;;  %v2516_v16 = vsel %vm2064_vm4, %v2515_v14, -inf }
 0x303   : > { %2517 = vmax.xlane.f32.xlu0 %v2516_v16  ;;  %v4372_v15 = vld [vmem:[#allocation8 + $0xa8] ss:$12 sps:$4 sm:$0xff]   ;;  %v4374_v16 = vld [vmem:[#allocation8 + $0xac] ss:$12 sps:$4 sm:$0xff]  }
 0x304   : > { %v2512_v17 = vpop.f32.mrf.mxu0  ;;  %3197 = vmatprep.subr.bf16.mxu0 %v4374_v16 }
 0x305   : > { %v4377_v17 = vld [vmem:[#allocation8 + $0x94] ss:$12 sps:$4 sm:$0xff]   ;;  %3198 = vmatpush1.bf16.msra.mxu0 %v4372_v15 }
 0x306   : > { %v3937_v18 = vpop.f32.mrf.mxu0  ;;  %3199 = vmatprep.subr.bf16.mxu0 %v4377_v17 }
 0x307   : > { %v4375_v18 = vld [vmem:[#allocation8 + $0x90] ss:$12 sps:$4 sm:$0xff]  }
 0x308   : > { %v2620_v20 = vpop.f32.mrf.mxu0 }
 0x309   : > { %v2626_v21 = vsel %vm4898_vm3, %v2620_v20, -1e+30  ;;  %v4380_v20 = vld [vmem:[#allocation8 + $0x7c] ss:$12 sps:$4 sm:$0xff]   ;;  %3200 = vmatpush1.bf16.msra.mxu0 %v4375_v18  ;;  %v4443_v18 = vld [vmem:[#allocation8 + $0x180] ss:$12 sps:$4 sm:$0xff]  }
 0x30a   : > { %v3948_v24 = vpop.f32.mrf.mxu0  ;;  %v2627_v25 = vsel %vm2064_vm4, %v2626_v21, -inf  ;;  %3201 = vmatprep.subr.bf16.mxu0 %v4380_v20  ;;  %v4445_v20 = vld [vmem:[#allocation8 + $0x184] ss:$12 sps:$4 sm:$0xff]  }
 0x30b   : > { %2628 = vmax.xlane.f32.xlu0 %v2627_v25  ;;  %v4405_v24 = vld [vmem:[#allocation8 + $0x228] ss:$12 sps:$4 sm:$0xff]   ;;  %v4407_v25 = vld [vmem:[#allocation8 + $0x22c] ss:$12 sps:$4 sm:$0xff]  }
 0x30c   : > { %v2623_v26 = vpop.f32.mrf.mxu0 }
 0x30d   : > { %v4383_v26 = vld [vmem:[#allocation8 + $0x64] ss:$12 sps:$4 sm:$0xff]  }
 0x30e   : > { %v3949_v27 = vpop.f32.mrf.mxu0 }
 0x30f   : > { %v4413_v27 = vld [vmem:[#allocation8 + $0x214] ss:$12 sps:$4 sm:$0xff]  }
 0x311   : > { %v2293_v31 = vpop.xlane.xlu0 %2292 }
 0x312   : > { %v2294_v58 = vsub.f32 %v4910_v57, %v2293_v31  ;;  %v2305_v57 = vsel %vm2078_vm2, %v2009_v28, 0  ;;  %v4384_v31 = vld [vmem:[#allocation8 + $0x48] ss:$12 sps:$4 sm:$0xff]  }
 0x314   : > { %v2295_v62 = vmul.f32 1.442695, %v2294_v58 }
 0x321   : > { %2413 = vrot.lane.b32.xlu0 %v2009_v28, %s4652_s21  ;;  %v4411_v28 = vld [vmem:[#allocation8 + $0x210] ss:$12 sps:$4 sm:$0xff]  }
 0x384   : > { %v2404_v29 = vpop.xlane.xlu1 %2403 }
 0x385   : > { %v2405_v30 = vsub.f32 %v2401_v7, %v2404_v29  ;;  %v4419_v29 = vld [vmem:[#allocation8 + $0x1fc] ss:$12 sps:$4 sm:$0xff]  }
 0x387   : > { %v2406_v53 = vmul.f32 1.442695, %v2405_v30  ;;  %v4386_v30 = vld [vmem:[#allocation8 + $0x4c] ss:$12 sps:$4 sm:$0xff]  }
 0x389   : > { %4470 = vpow2.f32 %v2406_v53  ;;  %v4417_v53 = vld [vmem:[#allocation8 + $0x1f8] ss:$12 sps:$4 sm:$0xff]  }
 0x38c   : > { %v2518_v32 = vpop.xlane.xlu0 %2517 }
 0x38d   : > { %v2519_v33 = vsub.f32 %v2515_v14, %v2518_v32  ;;  %v4425_v32 = vld [vmem:[#allocation8 + $0x1e4] ss:$12 sps:$4 sm:$0xff]  }
 0x38f   : > { %v2520_v34 = vmul.f32 1.442695, %v2519_v33  ;;  %v4389_v33 = vld [vmem:[#allocation8 + $0x34] ss:$12 sps:$4 sm:$0xff]  }
 0x391   : > { %4472 = vpow2.f32 %v2520_v34  ;;  %v4423_v34 = vld [vmem:[#allocation8 + $0x1e0] ss:$12 sps:$4 sm:$0xff]  }
 0x394   : > { %v2629_v52 = vpop.xlane.xlu0 %2628 }
 0x395   : > { %v2630_v54 = vsub.f32 %v2626_v21, %v2629_v52  ;;  %v4378_v21 = vld [vmem:[#allocation8 + $0x78] ss:$12 sps:$4 sm:$0xff]   ;;  %v4422_v52 = vld [vmem:[#allocation8 + $0xf4] ss:$12 sps:$4 sm:$0xff]  }
 0x396   : > { %v4471_v37 = vpop.eup %4470  ;;  %3202 = vmatpush1.bf16.msra.mxu0 %v4378_v21 }
 0x397   : > { %v2408_v38 = vsel %vm2064_vm4, %v4471_v37, 0.0  ;;  %v2631_v55 = vmul.f32 1.442695, %v2630_v54  ;;  %v2411_v8 = vpack.c.bf16 %v4471_v37, %v4471_v37  ;;  %3203 = vmatprep.subr.bf16.mxu0 %v4383_v26  ;;  %v4387_v37 = vld [vmem:[#allocation8 + $0x30] ss:$12 sps:$4 sm:$0xff]  }
 0x398   : > { %2409 = vadd.xlane.f32.xlu0 %v2408_v38  ;;  %v2414_v59 = vpop.permute.xlu0 %2413  ;;  %v4392_v38 = vld [vmem:[#allocation8 + $0x1c] ss:$12 sps:$4 sm:$0xff]  }
 0x399   : > { %4474 = vpow2.f32 %v2631_v55  ;;  %v2419_v7 = vsel %vm2078_vm2, %v2414_v59, 0  ;;  %v4420_v54 = vld [vmem:[#allocation8 + $0xf0] ss:$12 sps:$4 sm:$0xff]   ;;  %v4437_v59 = vld [vmem:[#allocation8 + $0x1b4] ss:$12 sps:$4 sm:$0xff]  }
 0x39a   : > { %v4428_v55 = vld [vmem:[#allocation8 + $0xdc] ss:$12 sps:$4 sm:$0xff]  }
 0x39e   : > { %v4935_v39 = vpop.eup %4472 }
 0x39f   : > { %v2522_v23 = vsel %vm2064_vm4, %v4935_v39, 0.0  ;;  %v2525_v12 = vpack.c.bf16 %v4935_v39, %v4935_v39  ;;  %v4390_v39 = vld [vmem:[#allocation8 + $0x18] ss:$12 sps:$4 sm:$0xff]  }
 0x3a0   : > { %2523 = vadd.xlane.f32.xlu0 %v2522_v23  ;;  %v4395_v23 = vld [vmem:[#allocation8 + $0x4] ss:$12 sps:$4 sm:$0xff]  }
 0x3a4   : > { %2072 = vadd.xlane.f32.xlu0 %v2071_v40  ;;  %v4393_v40 = vld [vmem:[#allocation8] ss:$12 sps:$4 sm:$0xff]  }
 0x3a6   : > { %v4475_v49 = vpop.eup %4474 }
 0x3a7   : > { %v2633_v56 = vsel %vm2064_vm4, %v4475_v49, 0.0  ;;  %v2636_v14 = vpack.c.bf16 %v4475_v49, %v4475_v49  ;;  %v4426_v49 = vld [vmem:[#allocation8 + $0xd8] ss:$12 sps:$4 sm:$0xff]  }
 0x3a9   : > { %v4940_v41 = vpop.f32.mrf.mxu1 }
 0x3ab   : > { %v3894_v42 = vpop.f32.mrf.mxu1 }
 0x3ac   : > { %v4398_v42 = vld [vmem:[#allocation8 + $0x16c] ss:$12 sps:$4 sm:$0xff]  }
 0x3ad   : > { %v2119_v43 = vpop.f32.mrf.mxu1 }
 0x3ae   : > { %v4396_v43 = vld [vmem:[#allocation8 + $0x168] ss:$12 sps:$4 sm:$0xff]  }
 0x3af   : > { %v3895_v44 = vpop.f32.mrf.mxu1 }
 0x3b0   : > { %v4401_v44 = vld [vmem:[#allocation8 + $0x154] ss:$12 sps:$4 sm:$0xff]  }
 0x3b1   : > { %v2170_v45 = vpop.f32.mrf.mxu1 }
 0x3b2   : > { %v2176_v46 = vsel %vm4898_vm3, %v2170_v45, -1e+30  ;;  %v4399_v45 = vld [vmem:[#allocation8 + $0x150] ss:$12 sps:$4 sm:$0xff]  }
 0x3b3   : > { %v3900_v48 = vpop.f32.mrf.mxu1  ;;  %v2177_v50 = vsel %vm2064_vm4, %v2176_v46, -inf }
 0x3b4   : > { %2178 = vmax.xlane.f32.xlu1 %v2177_v50  ;;  %v4402_v48 = vld [vmem:[#allocation8 + $0x138] ss:$12 sps:$4 sm:$0xff]  }
 0x3b5   : > { %v2173_v36 = vpop.f32.mrf.mxu1  ;;  %v4410_v50 = vld [vmem:[#allocation8 + $0x124] ss:$12 sps:$4 sm:$0xff]  }
 0x3b6   : > { %v4408_v36 = vld [vmem:[#allocation8 + $0x120] ss:$12 sps:$4 sm:$0xff]  }
 0x3b7   : > { %v3901_v9 = vpop.f32.mrf.mxu1 }
 0x3b8   : > { %v4416_v9 = vld [vmem:[#allocation8 + $0x10c] ss:$12 sps:$4 sm:$0xff]  }
 0x3c5   : > { %2188 = vrot.lane.b32.xlu1 %v4875_v22, %s4652_s21 }
 0x3c9   : > { %2638 = vrot.lane.b32.xlu1 %v2010_v51, %s4652_s21  ;;  %v4414_v51 = vld [vmem:[#allocation8 + $0x108] ss:$12 sps:$4 sm:$0xff]  }
 0x3ed   : > { %2634 = vadd.xlane.f32.xlu1 %v2633_v56 }
 0x421   : > { %v2410_v58 = vpop.xlane.xlu0 %2409 }
 0x43d   : > { %v2179_v60 = vpop.xlane.xlu1 %2178 }
 0x43e   : > { %v2180_v61 = vsub.f32 %v2176_v46, %v2179_v60  ;;  %v4404_v46 = vld [vmem:[#allocation8 + $0x13c] ss:$12 sps:$4 sm:$0xff]  }
 0x440   : > { %v2181_v63 = vmul.f32 1.442695, %v2180_v61 }
 0x441   : > { %v2189_v22 = vpop.permute.xlu1 %2188 }
 0x442   : > { %4476 = vpow2.f32 %v2181_v63  ;;  %v2194_v35 = vsel %vm2078_vm2, %v2189_v22, 0 }
 0x443   : > { %3903 = vmatpush3.bf16.msra.mxu1 %v2194_v35  ;;  %4478 = vpow2.f32 %v2295_v62  ;;  %v4431_v35 = vld [vmem:[#allocation8 + $0x1cc] ss:$12 sps:$4 sm:$0xff]  }
 0x444   : > { %3914 = vmatprep.subr.bf16.mxu1 %v4650_v19  ;;  %4480 = vrcp.f32 %v2410_v58 }
 0x445   : > { %v2639_v11 = vpop.permute.xlu1 %2638 }
 0x446   : > { %v2644_v13 = vsel %vm2078_vm2, %v2639_v11, 0  ;;  %v4441_v11 = vld [vmem:[#allocation8 + $0x19c] ss:$12 sps:$4 sm:$0xff]  }
 0x44f   : > { %v4477_v1 = vpop.eup %4476 }
 0x450   : > { %v2183_v2 = vsel %vm2064_vm4, %v4477_v1, 0.0  ;;  %v2186_v3 = vpack.c.bf16 %v4477_v1, %v4477_v1  ;;  %v4479_v4 = vpop.eup %4478 }
 0x451   : > { %2184 = vadd.xlane.f32.xlu1 %v2183_v2  ;;  %v2297_v5 = vsel %vm2064_vm4, %v4479_v4, 0.0  ;;  %v2300_v6 = vpack.c.bf16 %v4479_v4, %v4479_v4  ;;  %v4429_v2 = vld [vmem:[#allocation8 + $0x1c8] ss:$12 sps:$4 sm:$0xff]   ;;  %v4432_v4 = vld [vmem:[#allocation8 + $0xc0] ss:$12 sps:$4 sm:$0xff]  }
 0x452   : > { %3905 = vmatmul.mubr.msk.bf16.vlgmr.msra.gmra.mxu1 %vm2064_vm4, %v2186_v3  ;;  %v4434_v3 = vld [vmem:[#allocation8 + $0xc4] ss:$12 sps:$4 sm:$0xff]  }
 0x453   : > { %3915 = vmatpush3.bf16.msra.mxu1 %v2305_v57  ;;  %3916 = vmatprep.mubr.msk.bf16.mxu1 %vm4651_vm0, %v4650_v19 }
 0x454   : > { %3926 = vmatprep.subr.bf16.mxu1 %v4650_v19 }
 0x455   : > { %2298 = vadd.xlane.f32.xlu1 %v2297_v5  ;;  %v4435_v5 = vld [vmem:[#allocation8 + $0x1b0] ss:$12 sps:$4 sm:$0xff]  }
 0x45a   : > { %3917 = vmatmul.mubr.msk.bf16.vlgmr.msra.gmra.mxu1 %vm2064_vm4, %v2300_v6 }
 0x45b   : > { %3927 = vmatpush3.bf16.msra.mxu1 %v2419_v7  ;;  %3928 = vmatprep.mubr.msk.bf16.mxu1 %vm4651_vm0, %v4650_v19 }
 0x45c   : > { %3938 = vmatprep.subr.bf16.mxu1 %v4650_v19 }
 0x462   : > { %3929 = vmatmul.mubr.msk.bf16.vlgmr.msra.gmra.mxu1 %vm2064_vm4, %v2411_v8  ;;  %v4481_v8 = vpop.eup %4480 }
 0x463   : > { %3939 = vmatpush3.bf16.msra.mxu1 %v2530_v10  ;;  %3940 = vmatprep.mubr.msk.bf16.mxu1 %vm4651_vm0, %v4650_v19  ;;  %v4439_v10 = vld [vmem:[#allocation8 + $0x198] ss:$12 sps:$4 sm:$0xff]  }
 0x464   : > { %3950 = vmatprep.subr.bf16.mxu1 %v4650_v19 }
 0x46a   : > { %3941 = vmatmul.mubr.msk.bf16.vlgmr.msra.gmra.mxu1 %vm2064_vm4, %v2525_v12 }
 0x46b   : > { %3951 = vmatpush3.bf16.msra.mxu1 %v2644_v13  ;;  %3952 = vmatprep.mubr.msk.bf16.mxu1 %vm4651_vm0, %v4650_v19 }
 0x46c   : > { %3238 = vmatprep.subr.bf16.mxu1 %v4407_v25  ;;  %v4447_v25 = vld [vmem:[#allocation8 + $0x170] ss:$12 sps:$4 sm:$0xff]  }
 0x472   : > { %3953 = vmatmul.mubr.msk.bf16.vlgmr.msra.gmra.mxu1 %vm2064_vm4, %v2636_v14 }
 0x473   : > { %3270 = vmatprep.mubr.bf16.mxu1 %v4649_v0  ;;  %3239 = vmatpush1.bf16.msra.mxu1 %v4405_v24  ;;  %v4381_v0 = vld [vmem:[#allocation8 + $0x60] ss:$12 sps:$4 sm:$0xff]  }
 0x474   : > { %3240 = vmatprep.subr.bf16.mxu1 %v4413_v27  ;;  %3204 = vmatpush1.bf16.msra.mxu0 %v4381_v0 }
 0x475   : > { %3205 = vmatprep.subr.bf16.mxu0 %v4386_v30 }
 0x476   : > { %v2635_v56 = vpop.xlane.xlu1 %2634 }
 0x477   : > { %3241 = vmatpush1.bf16.msra.mxu1 %v4411_v28 }
 0x478   : > { %3242 = vmatprep.subr.bf16.mxu1 %v4419_v29  ;;  %3206 = vmatpush1.bf16.msra.mxu0 %v4384_v31 }
 0x479   : > { %3207 = vmatprep.subr.bf16.mxu0 %v4389_v33 }
 0x47b   : > { %3243 = vmatpush1.bf16.msra.mxu1 %v4417_v53 }
 0x47c   : > { %3244 = vmatprep.subr.bf16.mxu1 %v4425_v32  ;;  %3208 = vmatpush1.bf16.msra.mxu0 %v4387_v37 }
 0x47d   : > { %3209 = vmatprep.subr.bf16.mxu0 %v4392_v38 }
 0x47f   : > { %3245 = vmatpush1.bf16.msra.mxu1 %v4423_v34  ;;  %v2524_v34 = vpop.xlane.xlu0 %2523 }
 0x480   : > { %3210 = vmatpush1.bf16.msra.mxu0 %v4390_v39  ;;  %3246 = vmatprep.subr.bf16.mxu1 %v4431_v35  ;;  %v4454_v35 = vld [vmem:[#allocation8 + $0x80] ss:$12 sps:$4 sm:$0xff]  }
 0x481   : > { %3211 = vmatprep.subr.bf16.mxu0 %v4395_v23 }
 0x483   : > { %3247 = vmatpush1.bf16.msra.mxu1 %v4429_v2  ;;  %v2073_v37 = vpop.xlane.xlu0 %2072  ;;  %v4456_v2 = vld [vmem:[#allocation8 + $0x128] ss:$12 sps:$4 sm:$0xff]  }
 0x484   : > { %3212 = vmatpush1.bf16.msra.mxu0 %v4393_v40  ;;  %3248 = vmatprep.subr.bf16.mxu1 %v4437_v59  ;;  %v4461_v59 = vld [vmem:[#allocation8 + $0x188] ss:$12 sps:$4 sm:$0xff]  }
 0x485   : > { %3213 = vmatprep.subr.bf16.mxu0 %v4398_v42 }
 0x487   : > { %3249 = vmatpush1.bf16.msra.mxu1 %v4435_v5  ;;  %v4460_v5 = vld [vmem:[#allocation8 + $0x50] ss:$12 sps:$4 sm:$0xff]  }
 0x488   : > { %3214 = vmatpush2.bf16.msra.mxu0 %v4396_v43  ;;  %3250 = vmatprep.subr.bf16.mxu1 %v4441_v11  ;;  %v4466_v11 = vld [vmem:[#allocation8 + $0xc8] ss:$12 sps:$4 sm:$0xff]  }
 0x489   : > { %3215 = vmatprep.subr.bf16.mxu0 %v4401_v44 }
 0x48b   : > { %3251 = vmatpush1.bf16.msra.mxu1 %v4439_v10  ;;  %v4465_v10 = vld [vmem:[#allocation8 + $0x20] ss:$12 sps:$4 sm:$0xff]  }
 0x48c   : > { %3216 = vmatpush2.bf16.msra.mxu0 %v4399_v45  ;;  %3252 = vmatprep.subr.bf16.mxu1 %v4445_v20 }
 0x48d   : > { %3217 = vmatprep.subr.bf16.mxu0 %v4404_v46 }
 0x48f   : > { %3253 = vmatpush1.bf16.msra.mxu1 %v4443_v18 }
 0x490   : > { %3218 = vmatpush2.bf16.msra.mxu0 %v4402_v48  ;;  %3833 = vmatprep.subr.bf16.mxu1 %v4447_v25 }
 0x491   : > { %3219 = vmatprep.subr.bf16.mxu0 %v4410_v50 }
 0x494   : > { %3220 = vmatpush2.bf16.msra.mxu0 %v4408_v36 }
 0x495   : > { %3221 = vmatprep.subr.bf16.mxu0 %v4416_v9  ;;  %v4438_v9 = vld [vmem:[#allocation8 + $0x230] ss:$12 sps:$4 sm:$0xff]  }
 0x498   : > { %3222 = vmatpush2.bf16.msra.mxu0 %v4414_v51  ;;  %v4442_v51 = vld [vmem:[#allocation8 + $0x218] ss:$12 sps:$4 sm:$0xff]  }
 0x499   : > { %3223 = vmatprep.subr.bf16.mxu0 %v4422_v52  ;;  %v4446_v52 = vld [vmem:[#allocation8 + $0x200] ss:$12 sps:$4 sm:$0xff]  }
 0x49c   : > { %3224 = vmatpush2.bf16.msra.mxu0 %v4420_v54 }
 0x49d   : > { %3225 = vmatprep.subr.bf16.mxu0 %v4428_v55 }
 0x4a0   : > { %3226 = vmatpush2.bf16.msra.mxu0 %v4426_v49 }
 0x4a1   : > { %3227 = vmatprep.subr.bf16.mxu0 %v4434_v3  ;;  %v4457_v3 = vld [vmem:[#allocation8 + $0x68] ss:$12 sps:$4 sm:$0xff]  }
 0x4a4   : > { %3228 = vmatpush2.bf16.msra.mxu0 %v4432_v4  ;;  %v4458_v4 = vld [vmem:[#allocation8 + $0x1a0] ss:$12 sps:$4 sm:$0xff]  }
 0x4a5   : > { %3956 = vmatprep.subr.bf16.mxu0 %v4650_v19 }
 0x4da   : > { %v2185_v60 = vpop.xlane.xlu1 %2184 }
 0x4db   : > { %4482 = vrcp.f32 %v2185_v60  ;;  %v4449_v60 = vld [vmem:[#allocation8 + $0x1e8] ss:$12 sps:$4 sm:$0xff]  }
 0x4dc   : > { %4484 = vrcp.f32 %v2635_v56  ;;  %v4448_v56 = vld [vmem:[#allocation8 + $0xb0] ss:$12 sps:$4 sm:$0xff]  }
 0x4dd   : > { %4486 = vrcp.f32 %v2073_v37 }
 0x4de   : > { %v2299_v38 = vpop.xlane.xlu1 %2298 }
 0x4df   : > { %4488 = vrcp.f32 %v2299_v38 }
 0x4e0   : > { %4490 = vrcp.f32 %v2524_v34  ;;  %v2808_v34 = vsub.s32 2, %v4893_v47 }
 0x4e8   : > { %v4483_v12 = vpop.eup %4482 }
 0x4e9   : > { %v4485_v29 = vpop.eup %4484 }
 0x4ea   : > { %v4487_v39 = vpop.eup %4486 }
 0x4eb   : > { %v2123_v43 = vmul.f32 %v4487_v39, %v4940_v41 }
 0x4ec   : > { %v4489_v23 = vpop.eup %4488 }
 0x4ed   : > { %v4491_v41 = vpop.eup %4490 }
 0x512   : > { %v2230_v61 = vpop.f32.mrf.mxu1 }
 0x513   : > { %v2237_v14 = vmul.f32 %v4483_v12, %v2230_v61  ;;  %v4450_v61 = vld [vmem:[#allocation8 + $0x158] ss:$12 sps:$4 sm:$0xff]   ;;  %v4467_v12 = vld [vmem:[#allocation8 + $0x8] ss:$12 sps:$4 sm:$0xff]  }
 0x514   : > { %v3906_v62 = vpop.f32.mrf.mxu1 }
 0x515   : > { %v4451_v62 = vld [vmem:[#allocation8 + $0x98] ss:$12 sps:$4 sm:$0xff]  }
 0x516   : > { %v2233_v63 = vpop.f32.mrf.mxu1 }
 0x517   : > { %v4452_v63 = vld [vmem:[#allocation8 + $0x1d0] ss:$12 sps:$4 sm:$0xff]  }
 0x518   : > { %v3907_v22 = vpop.f32.mrf.mxu1 }
 0x519   : > { %v4453_v22 = vld [vmem:[#allocation8 + $0x140] ss:$12 sps:$4 sm:$0xff]  }
 0x51a   : > { %v2341_v1 = vpop.f32.mrf.mxu1 }
 0x51b   : > { %v2348_v42 = vmul.f32 %v4489_v23, %v2341_v1  ;;  %v4455_v1 = vld [vmem:[#allocation8 + $0x1b8] ss:$12 sps:$4 sm:$0xff]  }
 0x51c   : > { %v3918_v57 = vpop.f32.mrf.mxu1 }
 0x51d   : > { %v4459_v57 = vld [vmem:[#allocation8 + $0x110] ss:$12 sps:$4 sm:$0xff]  }
 0x51e   : > { %v2344_v6 = vpop.f32.mrf.mxu1 }
 0x51f   : > { %v4462_v6 = vld [vmem:[#allocation8 + $0xf8] ss:$12 sps:$4 sm:$0xff]  }
 0x520   : > { %v3919_v7 = vpop.f32.mrf.mxu1 }
 0x521   : > { %v4463_v7 = vld [vmem:[#allocation8 + $0x38] ss:$12 sps:$4 sm:$0xff]  }
 0x522   : > { %v2455_v13 = vpop.f32.mrf.mxu1 }
 0x523   : > { %v2462_v15 = vmul.f32 %v4481_v8, %v2455_v13  ;;  %v4464_v8 = vld [vmem:[#allocation8 + $0xe0] ss:$12 sps:$4 sm:$0xff]  }
 0x524   : > { %v3930_v16 = vpop.f32.mrf.mxu1 }
 0x525   : > { %v4055_v17 = vpack.i.bf16 %v2237_v14, %v2462_v15  ;;  %v2796_v15 = vld [vmem:[%s5045_s3] sm:$0x7]  ;;  %v2804_v16 = vsub.s32 1, %v4893_v47 }
 0x526   : > { %v2458_v21 = vpop.f32.mrf.mxu1  ;;  %v2809_v38 = vrot.slane %v2796_v15, %v2808_v34 }
 0x527   : > { %4056 = vrot.lane.b32.xlu0 %v4055_v17, %s4652_s21  ;;  %v2805_v21 = vrot.slane %v2796_v15, %v2804_v16 }
 0x528   : > { %v3931_v24 = vpop.f32.mrf.mxu1 }
 0x52a   : > { %v2566_v26 = vpop.f32.mrf.mxu1 }
 0x52b   : > { %v2573_v54 = vmul.f32 %v4491_v41, %v2566_v26 }
 0x52c   : > { %v3942_v27 = vpop.f32.mrf.mxu1 }
 0x52e   : > { %v2569_v28 = vpop.f32.mrf.mxu1 }
 0x530   : > { %v3943_v0 = vpop.f32.mrf.mxu1 }
 0x532   : > { %v2680_v30 = vpop.f32.mrf.mxu1 }
 0x533   : > { %v2687_v53 = vmul.f32 %v4485_v29, %v2680_v30 }
 0x534   : > { %v3954_v31 = vpop.f32.mrf.mxu1 }
 0x535   : > { %2689 = vrot.lane.b32.xlu1 %v2687_v53, %s4652_s21 }
 0x536   : > { %v2683_v32 = vpop.f32.mrf.mxu1 }
 0x538   : > { %v3955_v33 = vpop.f32.mrf.mxu1 }
 0x599   : > { %v4057_v40 = vpop.permute.xlu0 %4056 }
 0x59a   : > { %v4059_v44 = vunpack.i.h.bf16 %v4057_v40  ;;  %v4058_v45 = vunpack.i.l.bf16 %v4057_v40 }
 0x59c   : > { %v2242_v46 = vsel %vm2011_vm1, %v2123_v43, %v4059_v44  ;;  %v2467_v48 = vsel %vm2011_vm1, %v2348_v42, %v4058_v45 }
 0x59d   : > { %v4985_v50 = vpack.c.bf16 %v2242_v46, %v2242_v46  ;;  %v2698_v36 = vpack.c.bf16 %v2467_v48, %v2467_v48 }
 0x59f   : > { %3229 = vmatprep.mubr.bf16.mxu0 %v2698_v36 }
 0x5a0   : > { %3230 = vmatmul.mubr.bf16.vlgmr.msra.gmra.mxu0 %v4985_v50 }
 0x5a1   : > { %3957 = vmatpush3.bf16.msra.mxu0 %v4438_v9  ;;  %3972 = vmatprep.mubr.msk.bf16.mxu0 %vm4651_vm0, %v4650_v19 }
 0x5a2   : > { %3958 = vmatprep.subr.bf16.mxu0 %v4650_v19 }
 0x5a5   : > { %3959 = vmatpush3.bf16.msra.mxu0 %v4442_v51 }
 0x5a6   : > { %3960 = vmatprep.subr.bf16.mxu0 %v4650_v19 }
 0x5a7   : > { %v2690_v55 = vpop.permute.xlu1 %2689 }
 0x5a8   : > { %v2692_v49 = vsel %vm2011_vm1, %v2573_v54, %v2690_v55 }
 0x5a9   : > { %v2699_v58 = vpack.c.bf16 %v2692_v49, %v2692_v49  ;;  %3961 = vmatpush3.bf16.msra.mxu0 %v4446_v52 }
 0x5aa   : > { %3962 = vmatprep.subr.bf16.mxu0 %v4650_v19 }
 0x5ab   : > { %3271 = vmatmul.mubr.bf16.vlgmr.msra.gmra.mxu1 %v2699_v58 }
 0x5ac   : > { %3834 = vmatpush3.bf16.msra.mxu1 %v4448_v56  ;;  %3311 = vmatprep.mubr.bf16.mxu1 %v2698_v36 }
 0x5ad   : > { %3963 = vmatpush3.bf16.msra.mxu0 %v4449_v60  ;;  %3835 = vmatprep.subr.bf16.mxu1 %v4450_v61 }
 0x5ae   : > { %3964 = vmatprep.subr.bf16.mxu0 %v4650_v19 }
 0x5b0   : > { %3836 = vmatpush3.bf16.msra.mxu1 %v4451_v62 }
 0x5b1   : > { %3965 = vmatpush3.bf16.msra.mxu0 %v4452_v63  ;;  %3837 = vmatprep.subr.bf16.mxu1 %v4453_v22 }
 0x5b2   : > { %3966 = vmatprep.subr.bf16.mxu0 %v4650_v19 }
 0x5b4   : > { %3838 = vmatpush3.bf16.msra.mxu1 %v4454_v35 }
 0x5b5   : > { %3967 = vmatpush3.bf16.msra.mxu0 %v4455_v1  ;;  %3839 = vmatprep.subr.bf16.mxu1 %v4456_v2 }
 0x5b6   : > { %3968 = vmatprep.subr.bf16.mxu0 %v4650_v19 }
 0x5b8   : > { %3840 = vmatpush3.bf16.msra.mxu1 %v4457_v3 }
 0x5b9   : > { %3969 = vmatpush3.bf16.msra.mxu0 %v4458_v4  ;;  %3841 = vmatprep.subr.bf16.mxu1 %v4459_v57 }
 0x5ba   : > { %3970 = vmatprep.subr.bf16.mxu0 %v4650_v19  ;;  %v2800_v19 = vsub.s32 0, %v4893_v47 }
 0x5bc   : > { %3842 = vmatpush3.bf16.msra.mxu1 %v4460_v5  ;;  %v2801_v18 = vrot.slane %v2796_v15, %v2800_v19 }
 0x5bd   : > { %3971 = vmatpush3.bf16.msra.mxu0 %v4461_v59  ;;  %3843 = vmatprep.subr.bf16.mxu1 %v4462_v6 }
 0x5c0   : > { %3844 = vmatpush3.bf16.msra.mxu1 %v4463_v7  ;;  %3973 = vmatmul.mubr.bf16.vlgmr.msra.gmra.mxu0 %v2699_v58 }
 0x5c1   : > { %3845 = vmatprep.subr.bf16.mxu1 %v4464_v8 }
 0x5c4   : > { %3846 = vmatpush3.bf16.msra.mxu1 %v4465_v10 }
 0x5c5   : > { %3847 = vmatprep.subr.bf16.mxu1 %v4466_v11 }
 0x5c8   : > { %3848 = vmatpush3.bf16.msra.mxu1 %v4467_v12 }
 0x5cb   : > { %3312 = vmatmul.mubr.bf16.vlgmr.msra.gmra.mxu1 %v4985_v50 }
 0x660   : > { %v3231_v13 = vpop.f32.mrf.mxu0 }
 0x661   : > { %v3232_v24 = vadd.f32 %v3231_v13, %v2801_v18 }
 0x662   : > { %v3233_v14 = vpop.f32.mrf.mxu0 }
 0x663   : > { %v3234_v26 = vadd.f32 %v3233_v14, %v2805_v21 }
 0x664   : > { %v3235_v17 = vpop.f32.mrf.mxu0 }
 0x666   : > { %v3236_v20 = vpop.f32.mrf.mxu0 }
 0x66b   : > { %v3272_v25 = vpop.f32.mrf.mxu1 }
 0x66c   : > { %v3273_v27 = vadd.f32 %v3272_v25, %v3232_v24 }
 0x66d   : > { %v3274_v28 = vpop.f32.mrf.mxu1 }
 0x66e   : > { %3359 = vst [vmem:[%s242_s6] sm:$0xff] %v3273_v27  ;;  %v3275_v0 = vadd.f32 %v3274_v28, %v3234_v26 }
 0x66f   : > { %v3276_v29 = vpop.f32.mrf.mxu1 }
 0x670   : > { %3360 = vst [vmem:[%s242_s6 + $0x8] sm:$0xff] %v3275_v0 }
 0x671   : > { %v3277_v30 = vpop.f32.mrf.mxu1 }
 0x680   : > { %v3353_v53 = vpop.f32.mrf.mxu0 }
 0x682   : > { %v3974_v31 = vpop.f32.mrf.mxu0 }
 0x684   : > { %v3356_v32 = vpop.f32.mrf.mxu0 }
 0x686   : > { %v3975_v33 = vpop.f32.mrf.mxu0 }
 0x68b   : > { %v3849_v37 = vpop.f32.mrf.mxu1 }
 0x68d   : > { %v3850_v39 = vpop.f32.mrf.mxu1 }
 0x68e   : > { %v3851_v23 = vadd.f32 %v3850_v39, %v3849_v37 }
 0x68f   : > { %v3852_v40 = vpop.f32.mrf.mxu1 }
 0x690   : > { %v3314_v42 = vadd.f32 %v3851_v23, %v2809_v38 }
 0x691   : > { %v3853_v43 = vpop.f32.mrf.mxu1 }
 0x692   : > { %v3354_v44 = vadd.f32 %v3353_v53, %v3314_v42 }
 0x694   : > { %3361 = vst [vmem:[%s242_s6 + $0x10] sm:$0xff] %v3354_v44 }
 0x695   : > { %4585 = shalt.err (!%p4582_p9)
}
 0x696   : > { %s4586_s10 = scalar_lea.hbm %s3375_s28, 384  ;;  %s4590_s12 = scalar_lea.hbm %s5046_s4, 768 }
 0x697   : > { %p4587_p13 = scmp.ne.s32.totalorder %s3375_s28, %s4586_s10  ;;  %p4591_p4 = scmp.lt.s32.totalorder %s3375_s28, %s5046_s4 }
 0x698   : > { %p4592_p8 = scmp.lt.s32.totalorder %s4590_s12, %s4586_s10 }
 0x699   : > { %p4588_p5 = pnand %p4587_p13, %p5064_p0 }
 0x69a   : > { %p4593_p7 = por %p4592_p8, %p4591_p4 }
 0x69b   : > { %p4589_p10 = pneg %p4588_p5 }
 0x69d   : > { %p4594_p11 = pnand %p4593_p7, %p4589_p10 }
 0x69f   : > { %4597 = shalt.err (!%p4594_p11)
}
 0x6a0   : > { %3990 = dma.vmem_to_hbm [thread:$0]  (%p5064_p0), %s3378_s9, 384, %s3375_s28, %s3363_s27  }
 0x6a1 PF: > { %s3389_s29 = sand.u32 1, %s4628_s15   ;;  %p5065_p1 = scmp.ne.s32.totalorder %s5052_s22, 0 }
 0x6a2   : > { %p5066_p2 = scmp.ge.s32.totalorder %s4640_s18, 2  ;;  %s3390_s6 = scalar_lea.sflag [#allocation5], %s3389_s29 }
 0x6a4   : > { %p4004_p6 = pnand %p5066_p2, %p5065_p1 }
 0x6a6   : > { %p4005_p12 = pneg %p4004_p6 }
 0x6a8   : > { %4623 = dma.done.wait (%p4005_p12), %s3390_s6, 384  }
 0x6a9   : > { %4625 = vsyncadd (%p4005_p12), %s3390_s6, 4294966912  ;;  %p18_p3 = scmp.ge.s32.totalorder %s4751_s13, 4   ;;  %s5067_s15 = smov %s4632_s16 }
 0x6aa   : > { %s5068_s16 = smov %s4636_s17  ;;  %s5069_s17 = smov %s4760_s24 }
 0x6ab   : > { %s5070_s18 = smov %s4751_s13  ;;  %20 = sbr.rel (!%p18_p3) target bundleno = 6 (0x6), region = 89 }
 0x6b0   :  { %3395 = vsyncpa [#allocation4], 1 }
 0x6b1   :  { %3397 = vsyncpa [#allocation4 + $0x1], 1 }
 0x6b2   :  { %3398 = vsyncpa [#allocation7], 1 }
 0x6b3   :  { %3399 = vsyncpa [#allocation5], 1 }
 0x6b4   :  { %3401 = vsyncpa [#allocation5 + $0x1], 1 }

</bundles_post_ra>
